<compile_context>
chip_gen: v7x
topology: tpu7x:2x2x1
jax: 0.10.0
libtpu: 0.0.40
codegen_flags: <defaults>
</compile_context>

<pallas_src>
import functools
import math

import jax
import jax.numpy as jnp
from jax.experimental import pallas as pl
from jax.experimental.pallas import tpu as pltpu


# ----------------------------- fused Pallas kernel -----------------------------

def _fused_forward_kernel(x_ref,
                          wqkv_ref, bqkv_ref, wo_ref, bo_ref,
                          ln1g_ref, ln1b_ref, w1_ref, b1_ref,
                          w2_ref, b2_ref, ln2g_ref, ln2b_ref,
                          hw1_ref, hb1_ref, hw2_ref, hb2_ref,
                          o_ref, *, nlayers, nhead, eps):
    """One batch element per grid step: full encoder stack + MLP head, VMEM-resident."""
    x = x_ref[0]                          # (S1, D)
    S1, D = x.shape
    dh = D // nhead
    scale = 1.0 / math.sqrt(dh)

    def layer_norm(z, g, b):
        mu = jnp.mean(z, axis=-1, keepdims=True)
        c = z - mu
        var = jnp.mean(c * c, axis=-1, keepdims=True)
        return c * jax.lax.rsqrt(var + eps) * g + b

    for l in range(nlayers):
        # --- fused QKV projection: one lane-dense (S1, 3D) matmul ---
        qkv = jnp.dot(x, wqkv_ref[l], preferred_element_type=jnp.float32) + bqkv_ref[l]
        q = qkv[:, :D] * scale            # fold 1/sqrt(dh) into q (smaller than scaling scores)
        k = qkv[:, D:2 * D]
        v = qkv[:, 2 * D:]

        # --- multi-head attention on VMEM values (no HBM transposes) ---
        heads = []
        for h in range(nhead):
            sl = slice(h * dh, (h + 1) * dh)
            qh, kh, vh = q[:, sl], k[:, sl], v[:, sl]
            s = jax.lax.dot_general(qh, kh, (((1,), (1,)), ((), ())),
                                    preferred_element_type=jnp.float32)   # (S1, S1)
            m = jnp.max(s, axis=-1, keepdims=True)
            p = jnp.exp(s - m)
            denom = jnp.sum(p, axis=-1, keepdims=True)
            p = p * pl.reciprocal(denom, approx=True)                     # EUP, not VPU divide
            heads.append(jnp.dot(p, vh, preferred_element_type=jnp.float32))
        attn = jnp.concatenate(heads, axis=-1)                            # (S1, D)

        # --- output projection + residual + LayerNorm (post-LN) ---
        attn = jnp.dot(attn, wo_ref[l], preferred_element_type=jnp.float32) + bo_ref[l]
        h1 = layer_norm(x + attn, ln1g_ref[l], ln1b_ref[l])

        # --- FFN (ReLU) + residual + LayerNorm ---
        ff = jnp.dot(h1, w1_ref[l], preferred_element_type=jnp.float32) + b1_ref[l]
        ff = jnp.maximum(ff, 0.0)
        ff = jnp.dot(ff, w2_ref[l], preferred_element_type=jnp.float32) + b2_ref[l]
        x = layer_norm(h1 + ff, ln2g_ref[l], ln2b_ref[l])

    # --- 'cls' fingerprint + MLP head, fused in the same kernel ---
    feat = x[0:1, :]                                                       # (1, D)
    hid = jnp.dot(feat, hw1_ref[...], preferred_element_type=jnp.float32) + hb1_ref[...]
    hid = jnp.maximum(hid, 0.0)
    out = jnp.dot(hid, hw2_ref[...], preferred_element_type=jnp.float32) + hb2_ref[...]
    o_ref[0] = out.astype(o_ref.dtype)


def _full_spec(shape):
    """Whole-array block with a constant index_map -> stays VMEM-resident across grid steps."""
    return pl.BlockSpec(shape, lambda b: (0,) * len(shape))


# --------------------------- model (glue + fused kernel) ---------------------------

def transformer_plus_head_forward(params, token_ids, *, nhead):
    """features = encoder.encode(x, method='cls'); output = head(features)."""
    B, S = token_ids.shape
    D = params["emb"].shape[1]
    # TODO(synk): the real DFSCodeEncoder embeds 5-tuple DFS codes + positional
    # encoding; simplified here to a token-id embedding lookup (glue, not hot path).
    tok = jnp.take(params["emb"], token_ids, axis=0)                       # (B, S, D)
    cls = jnp.broadcast_to(params["cls"], (B, 1, D))
    x = jnp.concatenate([cls, tok], axis=1).astype(jnp.float32)            # (B, S1, D)
    S1 = S + 1

    weight_keys = ["wqkv", "bqkv", "wo", "bo", "ln1_g", "ln1_b",
                   "w1", "b1", "w2", "b2", "ln2_g", "ln2_b",
                   "head_w1", "head_b1", "head_w2", "head_b2"]
    weights = [params[k] for k in weight_keys]
    nlayers = params["wqkv"].shape[0]
    n_classes = params["head_w2"].shape[1]

    kernel = functools.partial(_fused_forward_kernel,
                               nlayers=nlayers, nhead=nhead, eps=1e-5)

    out = pl.pallas_call(
        kernel,
        grid=(B,),
        in_specs=[pl.BlockSpec((1, S1, D), lambda b: (b, 0, 0))]
                 + [_full_spec(w_.shape) for w_ in weights],
        out_specs=pl.BlockSpec((1, 1, n_classes), lambda b: (b, 0, 0)),
        out_shape=jax.ShapeDtypeStruct((B, 1, n_classes), jnp.float32),
        compiler_params=pltpu.CompilerParams(
            dimension_semantics=("parallel",)),   # v7x: shard batch over 2 TensorCores
    )(x, *weights)
    return out[:, 0, :]                                                    # (B, n_classes)


# ------------------------------ parameter init ------------------------------

def init_params(key, *, vocab, d_model, nhead, nlayers, dim_ff,
                n_encoding, n_classes):
    keys = iter(jax.random.split(key, 16 + nlayers * 8))

    def w(shape, scale=0.1):
        return (scale * jax.random.normal(next(keys), shape)).astype(jnp.float32)

    def z(shape):
        return jnp.zeros(shape, jnp.float32)

    def ones(shape):
        return jnp.ones(shape, jnp.float32)

    wqkv, bqkv, wo, bo = [], [], [], []
    ln1g, ln1b, w1, b1, w2, b2, ln2g, ln2b = [], [], [], [], [], [], [], []
    for _ in range(nlayers):
        wqkv.append(w((d_model, 3 * d_model)))      # fused [Wq | Wk | Wv]
        bqkv.append(z((1, 3 * d_model)))
        wo.append(w((d_model, d_model)))
        bo.append(z((1, d_model)))
        ln1g.append(ones((1, d_model)))
        ln1b.append(z((1, d_model)))
        w1.append(w((d_model, dim_ff)))
        b1.append(z((1, dim_ff)))
        w2.append(w((dim_ff, d_model)))
        b2.append(z((1, d_model)))
        ln2g.append(ones((1, d_model)))
        ln2b.append(z((1, d_model)))

    params = {
        "emb": w((vocab, d_model)),
        "cls": w((1, 1, d_model)),
        "wqkv": jnp.stack(wqkv), "bqkv": jnp.stack(bqkv),
        "wo": jnp.stack(wo), "bo": jnp.stack(bo),
        "ln1_g": jnp.stack(ln1g), "ln1_b": jnp.stack(ln1b),
        "w1": jnp.stack(w1), "b1": jnp.stack(b1),
        "w2": jnp.stack(w2), "b2": jnp.stack(b2),
        "ln2_g": jnp.stack(ln2g), "ln2_b": jnp.stack(ln2b),
        # head (n_hidden=1): Linear(n_enc, n_enc//2) -> ReLU -> Linear(n_enc//2, n_classes)
        "head_w1": w((n_encoding, n_encoding // 2)),
        "head_b1": z((1, n_encoding // 2)),
        "head_w2": w((n_encoding // 2, n_classes)),
        "head_b2": z((1, n_classes)),
    }
    return params


# ----------------------------------- main -----------------------------------

if __name__ == "__main__":
    key = jax.random.PRNGKey(0)
    k_param, k_tok = jax.random.split(key)

    B, S = 2, 8            # batch, sequence length (before CLS)
    D = 32                 # ninp / d_model
    NHEAD, NLAYERS, DFF = 4, 2, 64
    N_ENCODING = D         # 'cls' fingerprint dim == ninp
    N_CLASSES = 3
    VOCAB = 20

    params = init_params(k_param, vocab=VOCAB, d_model=D, nhead=NHEAD,
                         nlayers=NLAYERS, dim_ff=DFF,
                         n_encoding=N_ENCODING, n_classes=N_CLASSES)
    token_ids = jax.random.randint(k_tok, (B, S), 0, VOCAB, dtype=jnp.int32)

    out = transformer_plus_head_forward(params, token_ids, nhead=NHEAD)
    out = jax.block_until_ready(out)
    assert out.shape == (B, N_CLASSES)
    assert bool(jnp.all(jnp.isfinite(out)))
    print("KERNEL_OK")
</pallas_src>

<mosaic_0001>
module attributes {stable_mosaic.version = 11 : i64} {
  func.func @_fused_forward_kernel(%arg0: i32, %arg1: memref<1x9x32xf32, #tpu.memory_space<vmem>>, %arg2: memref<2x32x96xf32, #tpu.memory_space<vmem>>, %arg3: memref<2x1x96xf32, #tpu.memory_space<vmem>>, %arg4: memref<2x32x32xf32, #tpu.memory_space<vmem>>, %arg5: memref<2x1x32xf32, #tpu.memory_space<vmem>>, %arg6: memref<2x1x32xf32, #tpu.memory_space<vmem>>, %arg7: memref<2x1x32xf32, #tpu.memory_space<vmem>>, %arg8: memref<2x32x64xf32, #tpu.memory_space<vmem>>, %arg9: memref<2x1x64xf32, #tpu.memory_space<vmem>>, %arg10: memref<2x64x32xf32, #tpu.memory_space<vmem>>, %arg11: memref<2x1x32xf32, #tpu.memory_space<vmem>>, %arg12: memref<2x1x32xf32, #tpu.memory_space<vmem>>, %arg13: memref<2x1x32xf32, #tpu.memory_space<vmem>>, %arg14: memref<32x16xf32, #tpu.memory_space<vmem>>, %arg15: memref<1x16xf32, #tpu.memory_space<vmem>>, %arg16: memref<16x3xf32, #tpu.memory_space<vmem>>, %arg17: memref<1x3xf32, #tpu.memory_space<vmem>>, %arg18: memref<1x1x3xf32, #tpu.memory_space<vmem>>) attributes {dimension_semantics = [#tpu.dimension_semantics<parallel>], iteration_bounds = array<i64: 2>, scalar_prefetch = 0 : i64, scratch_operands = 0 : i64, tpu.core_type = #tpu.core_type<tc>, window_params = [{transform_indices = @transform_0, window_bounds = array<i64: 1, 9, 32>}, {pipeline_mode = #tpu.pipeline_mode<synchronous>, transform_indices = @transform_1, window_bounds = array<i64: 2, 32, 96>}, {pipeline_mode = #tpu.pipeline_mode<synchronous>, transform_indices = @transform_2, window_bounds = array<i64: 2, 1, 96>}, {pipeline_mode = #tpu.pipeline_mode<synchronous>, transform_indices = @transform_3, window_bounds = array<i64: 2, 32, 32>}, {pipeline_mode = #tpu.pipeline_mode<synchronous>, transform_indices = @transform_4, window_bounds = array<i64: 2, 1, 32>}, {pipeline_mode = #tpu.pipeline_mode<synchronous>, transform_indices = @transform_5, window_bounds = array<i64: 2, 1, 32>}, {pipeline_mode = #tpu.pipeline_mode<synchronous>, transform_indices = @transform_6, window_bounds = array<i64: 2, 1, 32>}, {pipeline_mode = #tpu.pipeline_mode<synchronous>, transform_indices = @transform_7, window_bounds = array<i64: 2, 32, 64>}, {pipeline_mode = #tpu.pipeline_mode<synchronous>, transform_indices = @transform_8, window_bounds = array<i64: 2, 1, 64>}, {pipeline_mode = #tpu.pipeline_mode<synchronous>, transform_indices = @transform_9, window_bounds = array<i64: 2, 64, 32>}, {pipeline_mode = #tpu.pipeline_mode<synchronous>, transform_indices = @transform_10, window_bounds = array<i64: 2, 1, 32>}, {pipeline_mode = #tpu.pipeline_mode<synchronous>, transform_indices = @transform_11, window_bounds = array<i64: 2, 1, 32>}, {pipeline_mode = #tpu.pipeline_mode<synchronous>, transform_indices = @transform_12, window_bounds = array<i64: 2, 1, 32>}, {pipeline_mode = #tpu.pipeline_mode<synchronous>, transform_indices = @transform_13, window_bounds = array<i64: 32, 16>}, {pipeline_mode = #tpu.pipeline_mode<synchronous>, transform_indices = @transform_14, window_bounds = array<i64: 1, 16>}, {pipeline_mode = #tpu.pipeline_mode<synchronous>, transform_indices = @transform_15, window_bounds = array<i64: 16, 3>}, {pipeline_mode = #tpu.pipeline_mode<synchronous>, transform_indices = @transform_16, window_bounds = array<i64: 1, 3>}, {transform_indices = @transform_17, window_bounds = array<i64: 1, 1, 3>}]} {
    %c0 = arith.constant 0 : index
    %c0_0 = arith.constant 0 : index
    %c0_1 = arith.constant 0 : index
    %0 = vector.load %arg1[%c0, %c0_0, %c0_1] : memref<1x9x32xf32, #tpu.memory_space<vmem>>, vector<1x9x32xf32>
    %1 = vector.shape_cast %0 : vector<1x9x32xf32> to vector<9x32xf32>
    %c0_2 = arith.constant 0 : index
    %c0_3 = arith.constant 0 : index
    %c0_4 = arith.constant 0 : index
    %2 = vector.load %arg2[%c0_2, %c0_3, %c0_4] : memref<2x32x96xf32, #tpu.memory_space<vmem>>, vector<1x32x96xf32>
    %3 = vector.shape_cast %2 : vector<1x32x96xf32> to vector<32x96xf32>
    %cst = arith.constant dense<0.000000e+00> : vector<9x96xf32>
    %4 = tpu.matmul %1, %3, %cst {dimension_numbers = #tpu.dot_dimension_numbers<[1], [0], [0], [1], [0, 0, 1, 1], [], []>} : vector<9x32xf32>, vector<32x96xf32>, vector<9x96xf32> -> vector<9x96xf32>
    %c0_5 = arith.constant 0 : index
    %c0_6 = arith.constant 0 : index
    %c0_7 = arith.constant 0 : index
    %5 = vector.load %arg3[%c0_5, %c0_6, %c0_7] : memref<2x1x96xf32, #tpu.memory_space<vmem>>, vector<1x1x96xf32>
    %6 = vector.shape_cast %5 : vector<1x1x96xf32> to vector<1x96xf32>
    %7 = vector.broadcast %6 : vector<1x96xf32> to vector<9x96xf32>
    %8 = arith.addf %4, %7 : vector<9x96xf32>
    %9 = vector.extract_strided_slice %8 {offsets = [0, 0], sizes = [9, 32], strides = [1, 1]} : vector<9x96xf32> to vector<9x32xf32>
    %cst_8 = arith.constant 0.353553385 : f32
    %10 = vector.broadcast %cst_8 : f32 to vector<9x32xf32>
    %11 = arith.mulf %9, %10 : vector<9x32xf32>
    %12 = vector.extract_strided_slice %8 {offsets = [0, 32], sizes = [9, 32], strides = [1, 1]} : vector<9x96xf32> to vector<9x32xf32>
    %13 = vector.extract_strided_slice %8 {offsets = [0, 64], sizes = [9, 32], strides = [1, 1]} : vector<9x96xf32> to vector<9x32xf32>
    %14 = vector.extract_strided_slice %11 {offsets = [0, 0], sizes = [9, 8], strides = [1, 1]} : vector<9x32xf32> to vector<9x8xf32>
    %15 = vector.extract_strided_slice %12 {offsets = [0, 0], sizes = [9, 8], strides = [1, 1]} : vector<9x32xf32> to vector<9x8xf32>
    %16 = vector.extract_strided_slice %13 {offsets = [0, 0], sizes = [9, 8], strides = [1, 1]} : vector<9x32xf32> to vector<9x8xf32>
    %cst_9 = arith.constant dense<0.000000e+00> : vector<9x9xf32>
    %17 = tpu.matmul %14, %15, %cst_9 {dimension_numbers = #tpu.dot_dimension_numbers<[1], [1], [0], [0], [0, 0, 1, 0], [], []>} : vector<9x8xf32>, vector<9x8xf32>, vector<9x9xf32> -> vector<9x9xf32>
    %cst_10 = arith.constant dense<0xFF800000> : vector<9xf32>
    %18 = vector.multi_reduction <maximumf>, %17, %cst_10 [1] : vector<9x9xf32> to vector<9xf32>
    %19 = vector.shape_cast %18 : vector<9xf32> to vector<9x1xf32>
    %20 = vector.broadcast %19 : vector<9x1xf32> to vector<9x9xf32>
    %21 = arith.subf %17, %20 : vector<9x9xf32>
    %22 = math.exp %21 : vector<9x9xf32>
    %cst_11 = arith.constant dense<0.000000e+00> : vector<9xf32>
    %23 = vector.multi_reduction <add>, %22, %cst_11 [1] : vector<9x9xf32> to vector<9xf32>
    %24 = vector.shape_cast %23 : vector<9xf32> to vector<9x1xf32>
    %25 = tpu.reciprocal %24 {approx = true} : vector<9x1xf32> -> vector<9x1xf32>
    %26 = vector.broadcast %25 : vector<9x1xf32> to vector<9x9xf32>
    %27 = arith.mulf %22, %26 : vector<9x9xf32>
    %cst_12 = arith.constant dense<0.000000e+00> : vector<9x8xf32>
    %28 = tpu.matmul %27, %16, %cst_12 {dimension_numbers = #tpu.dot_dimension_numbers<[1], [0], [0], [1], [0, 0, 1, 1], [], []>} : vector<9x9xf32>, vector<9x8xf32>, vector<9x8xf32> -> vector<9x8xf32>
    %29 = vector.extract_strided_slice %11 {offsets = [0, 8], sizes = [9, 8], strides = [1, 1]} : vector<9x32xf32> to vector<9x8xf32>
    %30 = vector.extract_strided_slice %12 {offsets = [0, 8], sizes = [9, 8], strides = [1, 1]} : vector<9x32xf32> to vector<9x8xf32>
    %31 = vector.extract_strided_slice %13 {offsets = [0, 8], sizes = [9, 8], strides = [1, 1]} : vector<9x32xf32> to vector<9x8xf32>
    %cst_13 = arith.constant dense<0.000000e+00> : vector<9x9xf32>
    %32 = tpu.matmul %29, %30, %cst_13 {dimension_numbers = #tpu.dot_dimension_numbers<[1], [1], [0], [0], [0, 0, 1, 0], [], []>} : vector<9x8xf32>, vector<9x8xf32>, vector<9x9xf32> -> vector<9x9xf32>
    %cst_14 = arith.constant dense<0xFF800000> : vector<9xf32>
    %33 = vector.multi_reduction <maximumf>, %32, %cst_14 [1] : vector<9x9xf32> to vector<9xf32>
    %34 = vector.shape_cast %33 : vector<9xf32> to vector<9x1xf32>
    %35 = vector.broadcast %34 : vector<9x1xf32> to vector<9x9xf32>
    %36 = arith.subf %32, %35 : vector<9x9xf32>
    %37 = math.exp %36 : vector<9x9xf32>
    %cst_15 = arith.constant dense<0.000000e+00> : vector<9xf32>
    %38 = vector.multi_reduction <add>, %37, %cst_15 [1] : vector<9x9xf32> to vector<9xf32>
    %39 = vector.shape_cast %38 : vector<9xf32> to vector<9x1xf32>
    %40 = tpu.reciprocal %39 {approx = true} : vector<9x1xf32> -> vector<9x1xf32>
    %41 = vector.broadcast %40 : vector<9x1xf32> to vector<9x9xf32>
    %42 = arith.mulf %37, %41 : vector<9x9xf32>
    %cst_16 = arith.constant dense<0.000000e+00> : vector<9x8xf32>
    %43 = tpu.matmul %42, %31, %cst_16 {dimension_numbers = #tpu.dot_dimension_numbers<[1], [0], [0], [1], [0, 0, 1, 1], [], []>} : vector<9x9xf32>, vector<9x8xf32>, vector<9x8xf32> -> vector<9x8xf32>
    %44 = vector.extract_strided_slice %11 {offsets = [0, 16], sizes = [9, 8], strides = [1, 1]} : vector<9x32xf32> to vector<9x8xf32>
    %45 = vector.extract_strided_slice %12 {offsets = [0, 16], sizes = [9, 8], strides = [1, 1]} : vector<9x32xf32> to vector<9x8xf32>
    %46 = vector.extract_strided_slice %13 {offsets = [0, 16], sizes = [9, 8], strides = [1, 1]} : vector<9x32xf32> to vector<9x8xf32>
    %cst_17 = arith.constant dense<0.000000e+00> : vector<9x9xf32>
    %47 = tpu.matmul %44, %45, %cst_17 {dimension_numbers = #tpu.dot_dimension_numbers<[1], [1], [0], [0], [0, 0, 1, 0], [], []>} : vector<9x8xf32>, vector<9x8xf32>, vector<9x9xf32> -> vector<9x9xf32>
    %cst_18 = arith.constant dense<0xFF800000> : vector<9xf32>
    %48 = vector.multi_reduction <maximumf>, %47, %cst_18 [1] : vector<9x9xf32> to vector<9xf32>
    %49 = vector.shape_cast %48 : vector<9xf32> to vector<9x1xf32>
    %50 = vector.broadcast %49 : vector<9x1xf32> to vector<9x9xf32>
    %51 = arith.subf %47, %50 : vector<9x9xf32>
    %52 = math.exp %51 : vector<9x9xf32>
    %cst_19 = arith.constant dense<0.000000e+00> : vector<9xf32>
    %53 = vector.multi_reduction <add>, %52, %cst_19 [1] : vector<9x9xf32> to vector<9xf32>
    %54 = vector.shape_cast %53 : vector<9xf32> to vector<9x1xf32>
    %55 = tpu.reciprocal %54 {approx = true} : vector<9x1xf32> -> vector<9x1xf32>
    %56 = vector.broadcast %55 : vector<9x1xf32> to vector<9x9xf32>
    %57 = arith.mulf %52, %56 : vector<9x9xf32>
    %cst_20 = arith.constant dense<0.000000e+00> : vector<9x8xf32>
    %58 = tpu.matmul %57, %46, %cst_20 {dimension_numbers = #tpu.dot_dimension_numbers<[1], [0], [0], [1], [0, 0, 1, 1], [], []>} : vector<9x9xf32>, vector<9x8xf32>, vector<9x8xf32> -> vector<9x8xf32>
    %59 = vector.extract_strided_slice %11 {offsets = [0, 24], sizes = [9, 8], strides = [1, 1]} : vector<9x32xf32> to vector<9x8xf32>
    %60 = vector.extract_strided_slice %12 {offsets = [0, 24], sizes = [9, 8], strides = [1, 1]} : vector<9x32xf32> to vector<9x8xf32>
    %61 = vector.extract_strided_slice %13 {offsets = [0, 24], sizes = [9, 8], strides = [1, 1]} : vector<9x32xf32> to vector<9x8xf32>
    %cst_21 = arith.constant dense<0.000000e+00> : vector<9x9xf32>
    %62 = tpu.matmul %59, %60, %cst_21 {dimension_numbers = #tpu.dot_dimension_numbers<[1], [1], [0], [0], [0, 0, 1, 0], [], []>} : vector<9x8xf32>, vector<9x8xf32>, vector<9x9xf32> -> vector<9x9xf32>
    %cst_22 = arith.constant dense<0xFF800000> : vector<9xf32>
    %63 = vector.multi_reduction <maximumf>, %62, %cst_22 [1] : vector<9x9xf32> to vector<9xf32>
    %64 = vector.shape_cast %63 : vector<9xf32> to vector<9x1xf32>
    %65 = vector.broadcast %64 : vector<9x1xf32> to vector<9x9xf32>
    %66 = arith.subf %62, %65 : vector<9x9xf32>
    %67 = math.exp %66 : vector<9x9xf32>
    %cst_23 = arith.constant dense<0.000000e+00> : vector<9xf32>
    %68 = vector.multi_reduction <add>, %67, %cst_23 [1] : vector<9x9xf32> to vector<9xf32>
    %69 = vector.shape_cast %68 : vector<9xf32> to vector<9x1xf32>
    %70 = tpu.reciprocal %69 {approx = true} : vector<9x1xf32> -> vector<9x1xf32>
    %71 = vector.broadcast %70 : vector<9x1xf32> to vector<9x9xf32>
    %72 = arith.mulf %67, %71 : vector<9x9xf32>
    %cst_24 = arith.constant dense<0.000000e+00> : vector<9x8xf32>
    %73 = tpu.matmul %72, %61, %cst_24 {dimension_numbers = #tpu.dot_dimension_numbers<[1], [0], [0], [1], [0, 0, 1, 1], [], []>} : vector<9x9xf32>, vector<9x8xf32>, vector<9x8xf32> -> vector<9x8xf32>
    %74 = tpu.concatenate %28, %43, %58, %73 in 1 : vector<9x8xf32>, vector<9x8xf32>, vector<9x8xf32>, vector<9x8xf32> -> vector<9x32xf32>
    %c0_25 = arith.constant 0 : index
    %c0_26 = arith.constant 0 : index
    %c0_27 = arith.constant 0 : index
    %75 = vector.load %arg4[%c0_25, %c0_26, %c0_27] : memref<2x32x32xf32, #tpu.memory_space<vmem>>, vector<1x32x32xf32>
    %76 = vector.shape_cast %75 : vector<1x32x32xf32> to vector<32x32xf32>
    %cst_28 = arith.constant dense<0.000000e+00> : vector<9x32xf32>
    %77 = tpu.matmul %74, %76, %cst_28 {dimension_numbers = #tpu.dot_dimension_numbers<[1], [0], [0], [1], [0, 0, 1, 1], [], []>} : vector<9x32xf32>, vector<32x32xf32>, vector<9x32xf32> -> vector<9x32xf32>
    %c0_29 = arith.constant 0 : index
    %c0_30 = arith.constant 0 : index
    %c0_31 = arith.constant 0 : index
    %78 = vector.load %arg5[%c0_29, %c0_30, %c0_31] : memref<2x1x32xf32, #tpu.memory_space<vmem>>, vector<1x1x32xf32>
    %79 = vector.shape_cast %78 : vector<1x1x32xf32> to vector<1x32xf32>
    %80 = vector.broadcast %79 : vector<1x32xf32> to vector<9x32xf32>
    %81 = arith.addf %77, %80 : vector<9x32xf32>
    %82 = arith.addf %1, %81 : vector<9x32xf32>
    %c0_32 = arith.constant 0 : index
    %c0_33 = arith.constant 0 : index
    %c0_34 = arith.constant 0 : index
    %83 = vector.load %arg6[%c0_32, %c0_33, %c0_34] : memref<2x1x32xf32, #tpu.memory_space<vmem>>, vector<1x1x32xf32>
    %84 = vector.shape_cast %83 : vector<1x1x32xf32> to vector<1x32xf32>
    %c0_35 = arith.constant 0 : index
    %c0_36 = arith.constant 0 : index
    %c0_37 = arith.constant 0 : index
    %85 = vector.load %arg7[%c0_35, %c0_36, %c0_37] : memref<2x1x32xf32, #tpu.memory_space<vmem>>, vector<1x1x32xf32>
    %86 = vector.shape_cast %85 : vector<1x1x32xf32> to vector<1x32xf32>
    %cst_38 = arith.constant dense<0.000000e+00> : vector<9xf32>
    %87 = vector.multi_reduction <add>, %82, %cst_38 [1] : vector<9x32xf32> to vector<9xf32>
    %88 = vector.shape_cast %87 : vector<9xf32> to vector<9x1xf32>
    %cst_39 = arith.constant 3.200000e+01 : f32
    %89 = vector.broadcast %cst_39 : f32 to vector<9x1xf32>
    %90 = arith.divf %88, %89 : vector<9x1xf32>
    %91 = vector.broadcast %90 : vector<9x1xf32> to vector<9x32xf32>
    %92 = arith.subf %82, %91 : vector<9x32xf32>
    %93 = arith.mulf %92, %92 : vector<9x32xf32>
    %cst_40 = arith.constant dense<0.000000e+00> : vector<9xf32>
    %94 = vector.multi_reduction <add>, %93, %cst_40 [1] : vector<9x32xf32> to vector<9xf32>
    %95 = vector.shape_cast %94 : vector<9xf32> to vector<9x1xf32>
    %cst_41 = arith.constant 3.200000e+01 : f32
    %96 = vector.broadcast %cst_41 : f32 to vector<9x1xf32>
    %97 = arith.divf %95, %96 : vector<9x1xf32>
    %cst_42 = arith.constant 9.99999974E-6 : f32
    %98 = vector.broadcast %cst_42 : f32 to vector<9x1xf32>
    %99 = arith.addf %97, %98 : vector<9x1xf32>
    %100 = math.rsqrt %99 : vector<9x1xf32>
    %101 = vector.broadcast %100 : vector<9x1xf32> to vector<9x32xf32>
    %102 = arith.mulf %92, %101 : vector<9x32xf32>
    %103 = vector.broadcast %84 : vector<1x32xf32> to vector<9x32xf32>
    %104 = arith.mulf %102, %103 : vector<9x32xf32>
    %105 = vector.broadcast %86 : vector<1x32xf32> to vector<9x32xf32>
    %106 = arith.addf %104, %105 : vector<9x32xf32>
    %c0_43 = arith.constant 0 : index
    %c0_44 = arith.constant 0 : index
    %c0_45 = arith.constant 0 : index
    %107 = vector.load %arg8[%c0_43, %c0_44, %c0_45] : memref<2x32x64xf32, #tpu.memory_space<vmem>>, vector<1x32x64xf32>
    %108 = vector.shape_cast %107 : vector<1x32x64xf32> to vector<32x64xf32>
    %cst_46 = arith.constant dense<0.000000e+00> : vector<9x64xf32>
    %109 = tpu.matmul %106, %108, %cst_46 {dimension_numbers = #tpu.dot_dimension_numbers<[1], [0], [0], [1], [0, 0, 1, 1], [], []>} : vector<9x32xf32>, vector<32x64xf32>, vector<9x64xf32> -> vector<9x64xf32>
    %c0_47 = arith.constant 0 : index
    %c0_48 = arith.constant 0 : index
    %c0_49 = arith.constant 0 : index
    %110 = vector.load %arg9[%c0_47, %c0_48, %c0_49] : memref<2x1x64xf32, #tpu.memory_space<vmem>>, vector<1x1x64xf32>
    %111 = vector.shape_cast %110 : vector<1x1x64xf32> to vector<1x64xf32>
    %112 = vector.broadcast %111 : vector<1x64xf32> to vector<9x64xf32>
    %113 = arith.addf %109, %112 : vector<9x64xf32>
    %cst_50 = arith.constant 0.000000e+00 : f32
    %114 = vector.broadcast %cst_50 : f32 to vector<9x64xf32>
    %115 = arith.maximumf %113, %114 : vector<9x64xf32>
    %c0_51 = arith.constant 0 : index
    %c0_52 = arith.constant 0 : index
    %c0_53 = arith.constant 0 : index
    %116 = vector.load %arg10[%c0_51, %c0_52, %c0_53] : memref<2x64x32xf32, #tpu.memory_space<vmem>>, vector<1x64x32xf32>
    %117 = vector.shape_cast %116 : vector<1x64x32xf32> to vector<64x32xf32>
    %cst_54 = arith.constant dense<0.000000e+00> : vector<9x32xf32>
    %118 = tpu.matmul %115, %117, %cst_54 {dimension_numbers = #tpu.dot_dimension_numbers<[1], [0], [0], [1], [0, 0, 1, 1], [], []>} : vector<9x64xf32>, vector<64x32xf32>, vector<9x32xf32> -> vector<9x32xf32>
    %c0_55 = arith.constant 0 : index
    %c0_56 = arith.constant 0 : index
    %c0_57 = arith.constant 0 : index
    %119 = vector.load %arg11[%c0_55, %c0_56, %c0_57] : memref<2x1x32xf32, #tpu.memory_space<vmem>>, vector<1x1x32xf32>
    %120 = vector.shape_cast %119 : vector<1x1x32xf32> to vector<1x32xf32>
    %121 = vector.broadcast %120 : vector<1x32xf32> to vector<9x32xf32>
    %122 = arith.addf %118, %121 : vector<9x32xf32>
    %123 = arith.addf %106, %122 : vector<9x32xf32>
    %c0_58 = arith.constant 0 : index
    %c0_59 = arith.constant 0 : index
    %c0_60 = arith.constant 0 : index
    %124 = vector.load %arg12[%c0_58, %c0_59, %c0_60] : memref<2x1x32xf32, #tpu.memory_space<vmem>>, vector<1x1x32xf32>
    %125 = vector.shape_cast %124 : vector<1x1x32xf32> to vector<1x32xf32>
    %c0_61 = arith.constant 0 : index
    %c0_62 = arith.constant 0 : index
    %c0_63 = arith.constant 0 : index
    %126 = vector.load %arg13[%c0_61, %c0_62, %c0_63] : memref<2x1x32xf32, #tpu.memory_space<vmem>>, vector<1x1x32xf32>
    %127 = vector.shape_cast %126 : vector<1x1x32xf32> to vector<1x32xf32>
    %cst_64 = arith.constant dense<0.000000e+00> : vector<9xf32>
    %128 = vector.multi_reduction <add>, %123, %cst_64 [1] : vector<9x32xf32> to vector<9xf32>
    %129 = vector.shape_cast %128 : vector<9xf32> to vector<9x1xf32>
    %cst_65 = arith.constant 3.200000e+01 : f32
    %130 = vector.broadcast %cst_65 : f32 to vector<9x1xf32>
    %131 = arith.divf %129, %130 : vector<9x1xf32>
    %132 = vector.broadcast %131 : vector<9x1xf32> to vector<9x32xf32>
    %133 = arith.subf %123, %132 : vector<9x32xf32>
    %134 = arith.mulf %133, %133 : vector<9x32xf32>
    %cst_66 = arith.constant dense<0.000000e+00> : vector<9xf32>
    %135 = vector.multi_reduction <add>, %134, %cst_66 [1] : vector<9x32xf32> to vector<9xf32>
    %136 = vector.shape_cast %135 : vector<9xf32> to vector<9x1xf32>
    %cst_67 = arith.constant 3.200000e+01 : f32
    %137 = vector.broadcast %cst_67 : f32 to vector<9x1xf32>
    %138 = arith.divf %136, %137 : vector<9x1xf32>
    %cst_68 = arith.constant 9.99999974E-6 : f32
    %139 = vector.broadcast %cst_68 : f32 to vector<9x1xf32>
    %140 = arith.addf %138, %139 : vector<9x1xf32>
    %141 = math.rsqrt %140 : vector<9x1xf32>
    %142 = vector.broadcast %141 : vector<9x1xf32> to vector<9x32xf32>
    %143 = arith.mulf %133, %142 : vector<9x32xf32>
    %144 = vector.broadcast %125 : vector<1x32xf32> to vector<9x32xf32>
    %145 = arith.mulf %143, %144 : vector<9x32xf32>
    %146 = vector.broadcast %127 : vector<1x32xf32> to vector<9x32xf32>
    %147 = arith.addf %145, %146 : vector<9x32xf32>
    %c1 = arith.constant 1 : index
    %c0_69 = arith.constant 0 : index
    %c0_70 = arith.constant 0 : index
    %148 = vector.load %arg2[%c1, %c0_69, %c0_70] : memref<2x32x96xf32, #tpu.memory_space<vmem>>, vector<1x32x96xf32>
    %149 = vector.shape_cast %148 : vector<1x32x96xf32> to vector<32x96xf32>
    %cst_71 = arith.constant dense<0.000000e+00> : vector<9x96xf32>
    %150 = tpu.matmul %147, %149, %cst_71 {dimension_numbers = #tpu.dot_dimension_numbers<[1], [0], [0], [1], [0, 0, 1, 1], [], []>} : vector<9x32xf32>, vector<32x96xf32>, vector<9x96xf32> -> vector<9x96xf32>
    %c1_72 = arith.constant 1 : index
    %c0_73 = arith.constant 0 : index
    %c0_74 = arith.constant 0 : index
    %151 = vector.load %arg3[%c1_72, %c0_73, %c0_74] : memref<2x1x96xf32, #tpu.memory_space<vmem>>, vector<1x1x96xf32>
    %152 = vector.shape_cast %151 : vector<1x1x96xf32> to vector<1x96xf32>
    %153 = vector.broadcast %152 : vector<1x96xf32> to vector<9x96xf32>
    %154 = arith.addf %150, %153 : vector<9x96xf32>
    %155 = vector.extract_strided_slice %154 {offsets = [0, 0], sizes = [9, 32], strides = [1, 1]} : vector<9x96xf32> to vector<9x32xf32>
    %cst_75 = arith.constant 0.353553385 : f32
    %156 = vector.broadcast %cst_75 : f32 to vector<9x32xf32>
    %157 = arith.mulf %155, %156 : vector<9x32xf32>
    %158 = vector.extract_strided_slice %154 {offsets = [0, 32], sizes = [9, 32], strides = [1, 1]} : vector<9x96xf32> to vector<9x32xf32>
    %159 = vector.extract_strided_slice %154 {offsets = [0, 64], sizes = [9, 32], strides = [1, 1]} : vector<9x96xf32> to vector<9x32xf32>
    %160 = vector.extract_strided_slice %157 {offsets = [0, 0], sizes = [9, 8], strides = [1, 1]} : vector<9x32xf32> to vector<9x8xf32>
    %161 = vector.extract_strided_slice %158 {offsets = [0, 0], sizes = [9, 8], strides = [1, 1]} : vector<9x32xf32> to vector<9x8xf32>
    %162 = vector.extract_strided_slice %159 {offsets = [0, 0], sizes = [9, 8], strides = [1, 1]} : vector<9x32xf32> to vector<9x8xf32>
    %cst_76 = arith.constant dense<0.000000e+00> : vector<9x9xf32>
    %163 = tpu.matmul %160, %161, %cst_76 {dimension_numbers = #tpu.dot_dimension_numbers<[1], [1], [0], [0], [0, 0, 1, 0], [], []>} : vector<9x8xf32>, vector<9x8xf32>, vector<9x9xf32> -> vector<9x9xf32>
    %cst_77 = arith.constant dense<0xFF800000> : vector<9xf32>
    %164 = vector.multi_reduction <maximumf>, %163, %cst_77 [1] : vector<9x9xf32> to vector<9xf32>
    %165 = vector.shape_cast %164 : vector<9xf32> to vector<9x1xf32>
    %166 = vector.broadcast %165 : vector<9x1xf32> to vector<9x9xf32>
    %167 = arith.subf %163, %166 : vector<9x9xf32>
    %168 = math.exp %167 : vector<9x9xf32>
    %cst_78 = arith.constant dense<0.000000e+00> : vector<9xf32>
    %169 = vector.multi_reduction <add>, %168, %cst_78 [1] : vector<9x9xf32> to vector<9xf32>
    %170 = vector.shape_cast %169 : vector<9xf32> to vector<9x1xf32>
    %171 = tpu.reciprocal %170 {approx = true} : vector<9x1xf32> -> vector<9x1xf32>
    %172 = vector.broadcast %171 : vector<9x1xf32> to vector<9x9xf32>
    %173 = arith.mulf %168, %172 : vector<9x9xf32>
    %cst_79 = arith.constant dense<0.000000e+00> : vector<9x8xf32>
    %174 = tpu.matmul %173, %162, %cst_79 {dimension_numbers = #tpu.dot_dimension_numbers<[1], [0], [0], [1], [0, 0, 1, 1], [], []>} : vector<9x9xf32>, vector<9x8xf32>, vector<9x8xf32> -> vector<9x8xf32>
    %175 = vector.extract_strided_slice %157 {offsets = [0, 8], sizes = [9, 8], strides = [1, 1]} : vector<9x32xf32> to vector<9x8xf32>
    %176 = vector.extract_strided_slice %158 {offsets = [0, 8], sizes = [9, 8], strides = [1, 1]} : vector<9x32xf32> to vector<9x8xf32>
    %177 = vector.extract_strided_slice %159 {offsets = [0, 8], sizes = [9, 8], strides = [1, 1]} : vector<9x32xf32> to vector<9x8xf32>
    %cst_80 = arith.constant dense<0.000000e+00> : vector<9x9xf32>
    %178 = tpu.matmul %175, %176, %cst_80 {dimension_numbers = #tpu.dot_dimension_numbers<[1], [1], [0], [0], [0, 0, 1, 0], [], []>} : vector<9x8xf32>, vector<9x8xf32>, vector<9x9xf32> -> vector<9x9xf32>
    %cst_81 = arith.constant dense<0xFF800000> : vector<9xf32>
    %179 = vector.multi_reduction <maximumf>, %178, %cst_81 [1] : vector<9x9xf32> to vector<9xf32>
    %180 = vector.shape_cast %179 : vector<9xf32> to vector<9x1xf32>
    %181 = vector.broadcast %180 : vector<9x1xf32> to vector<9x9xf32>
    %182 = arith.subf %178, %181 : vector<9x9xf32>
    %183 = math.exp %182 : vector<9x9xf32>
    %cst_82 = arith.constant dense<0.000000e+00> : vector<9xf32>
    %184 = vector.multi_reduction <add>, %183, %cst_82 [1] : vector<9x9xf32> to vector<9xf32>
    %185 = vector.shape_cast %184 : vector<9xf32> to vector<9x1xf32>
    %186 = tpu.reciprocal %185 {approx = true} : vector<9x1xf32> -> vector<9x1xf32>
    %187 = vector.broadcast %186 : vector<9x1xf32> to vector<9x9xf32>
    %188 = arith.mulf %183, %187 : vector<9x9xf32>
    %cst_83 = arith.constant dense<0.000000e+00> : vector<9x8xf32>
    %189 = tpu.matmul %188, %177, %cst_83 {dimension_numbers = #tpu.dot_dimension_numbers<[1], [0], [0], [1], [0, 0, 1, 1], [], []>} : vector<9x9xf32>, vector<9x8xf32>, vector<9x8xf32> -> vector<9x8xf32>
    %190 = vector.extract_strided_slice %157 {offsets = [0, 16], sizes = [9, 8], strides = [1, 1]} : vector<9x32xf32> to vector<9x8xf32>
    %191 = vector.extract_strided_slice %158 {offsets = [0, 16], sizes = [9, 8], strides = [1, 1]} : vector<9x32xf32> to vector<9x8xf32>
    %192 = vector.extract_strided_slice %159 {offsets = [0, 16], sizes = [9, 8], strides = [1, 1]} : vector<9x32xf32> to vector<9x8xf32>
    %cst_84 = arith.constant dense<0.000000e+00> : vector<9x9xf32>
    %193 = tpu.matmul %190, %191, %cst_84 {dimension_numbers = #tpu.dot_dimension_numbers<[1], [1], [0], [0], [0, 0, 1, 0], [], []>} : vector<9x8xf32>, vector<9x8xf32>, vector<9x9xf32> -> vector<9x9xf32>
    %cst_85 = arith.constant dense<0xFF800000> : vector<9xf32>
    %194 = vector.multi_reduction <maximumf>, %193, %cst_85 [1] : vector<9x9xf32> to vector<9xf32>
    %195 = vector.shape_cast %194 : vector<9xf32> to vector<9x1xf32>
    %196 = vector.broadcast %195 : vector<9x1xf32> to vector<9x9xf32>
    %197 = arith.subf %193, %196 : vector<9x9xf32>
    %198 = math.exp %197 : vector<9x9xf32>
    %cst_86 = arith.constant dense<0.000000e+00> : vector<9xf32>
    %199 = vector.multi_reduction <add>, %198, %cst_86 [1] : vector<9x9xf32> to vector<9xf32>
    %200 = vector.shape_cast %199 : vector<9xf32> to vector<9x1xf32>
    %201 = tpu.reciprocal %200 {approx = true} : vector<9x1xf32> -> vector<9x1xf32>
    %202 = vector.broadcast %201 : vector<9x1xf32> to vector<9x9xf32>
    %203 = arith.mulf %198, %202 : vector<9x9xf32>
    %cst_87 = arith.constant dense<0.000000e+00> : vector<9x8xf32>
    %204 = tpu.matmul %203, %192, %cst_87 {dimension_numbers = #tpu.dot_dimension_numbers<[1], [0], [0], [1], [0, 0, 1, 1], [], []>} : vector<9x9xf32>, vector<9x8xf32>, vector<9x8xf32> -> vector<9x8xf32>
    %205 = vector.extract_strided_slice %157 {offsets = [0, 24], sizes = [9, 8], strides = [1, 1]} : vector<9x32xf32> to vector<9x8xf32>
    %206 = vector.extract_strided_slice %158 {offsets = [0, 24], sizes = [9, 8], strides = [1, 1]} : vector<9x32xf32> to vector<9x8xf32>
    %207 = vector.extract_strided_slice %159 {offsets = [0, 24], sizes = [9, 8], strides = [1, 1]} : vector<9x32xf32> to vector<9x8xf32>
    %cst_88 = arith.constant dense<0.000000e+00> : vector<9x9xf32>
    %208 = tpu.matmul %205, %206, %cst_88 {dimension_numbers = #tpu.dot_dimension_numbers<[1], [1], [0], [0], [0, 0, 1, 0], [], []>} : vector<9x8xf32>, vector<9x8xf32>, vector<9x9xf32> -> vector<9x9xf32>
    %cst_89 = arith.constant dense<0xFF800000> : vector<9xf32>
    %209 = vector.multi_reduction <maximumf>, %208, %cst_89 [1] : vector<9x9xf32> to vector<9xf32>
    %210 = vector.shape_cast %209 : vector<9xf32> to vector<9x1xf32>
    %211 = vector.broadcast %210 : vector<9x1xf32> to vector<9x9xf32>
    %212 = arith.subf %208, %211 : vector<9x9xf32>
    %213 = math.exp %212 : vector<9x9xf32>
    %cst_90 = arith.constant dense<0.000000e+00> : vector<9xf32>
    %214 = vector.multi_reduction <add>, %213, %cst_90 [1] : vector<9x9xf32> to vector<9xf32>
    %215 = vector.shape_cast %214 : vector<9xf32> to vector<9x1xf32>
    %216 = tpu.reciprocal %215 {approx = true} : vector<9x1xf32> -> vector<9x1xf32>
    %217 = vector.broadcast %216 : vector<9x1xf32> to vector<9x9xf32>
    %218 = arith.mulf %213, %217 : vector<9x9xf32>
    %cst_91 = arith.constant dense<0.000000e+00> : vector<9x8xf32>
    %219 = tpu.matmul %218, %207, %cst_91 {dimension_numbers = #tpu.dot_dimension_numbers<[1], [0], [0], [1], [0, 0, 1, 1], [], []>} : vector<9x9xf32>, vector<9x8xf32>, vector<9x8xf32> -> vector<9x8xf32>
    %220 = tpu.concatenate %174, %189, %204, %219 in 1 : vector<9x8xf32>, vector<9x8xf32>, vector<9x8xf32>, vector<9x8xf32> -> vector<9x32xf32>
    %c1_92 = arith.constant 1 : index
    %c0_93 = arith.constant 0 : index
    %c0_94 = arith.constant 0 : index
    %221 = vector.load %arg4[%c1_92, %c0_93, %c0_94] : memref<2x32x32xf32, #tpu.memory_space<vmem>>, vector<1x32x32xf32>
    %222 = vector.shape_cast %221 : vector<1x32x32xf32> to vector<32x32xf32>
    %cst_95 = arith.constant dense<0.000000e+00> : vector<9x32xf32>
    %223 = tpu.matmul %220, %222, %cst_95 {dimension_numbers = #tpu.dot_dimension_numbers<[1], [0], [0], [1], [0, 0, 1, 1], [], []>} : vector<9x32xf32>, vector<32x32xf32>, vector<9x32xf32> -> vector<9x32xf32>
    %c1_96 = arith.constant 1 : index
    %c0_97 = arith.constant 0 : index
    %c0_98 = arith.constant 0 : index
    %224 = vector.load %arg5[%c1_96, %c0_97, %c0_98] : memref<2x1x32xf32, #tpu.memory_space<vmem>>, vector<1x1x32xf32>
    %225 = vector.shape_cast %224 : vector<1x1x32xf32> to vector<1x32xf32>
    %226 = vector.broadcast %225 : vector<1x32xf32> to vector<9x32xf32>
    %227 = arith.addf %223, %226 : vector<9x32xf32>
    %228 = arith.addf %147, %227 : vector<9x32xf32>
    %c1_99 = arith.constant 1 : index
    %c0_100 = arith.constant 0 : index
    %c0_101 = arith.constant 0 : index
    %229 = vector.load %arg6[%c1_99, %c0_100, %c0_101] : memref<2x1x32xf32, #tpu.memory_space<vmem>>, vector<1x1x32xf32>
    %230 = vector.shape_cast %229 : vector<1x1x32xf32> to vector<1x32xf32>
    %c1_102 = arith.constant 1 : index
    %c0_103 = arith.constant 0 : index
    %c0_104 = arith.constant 0 : index
    %231 = vector.load %arg7[%c1_102, %c0_103, %c0_104] : memref<2x1x32xf32, #tpu.memory_space<vmem>>, vector<1x1x32xf32>
    %232 = vector.shape_cast %231 : vector<1x1x32xf32> to vector<1x32xf32>
    %cst_105 = arith.constant dense<0.000000e+00> : vector<9xf32>
    %233 = vector.multi_reduction <add>, %228, %cst_105 [1] : vector<9x32xf32> to vector<9xf32>
    %234 = vector.shape_cast %233 : vector<9xf32> to vector<9x1xf32>
    %cst_106 = arith.constant 3.200000e+01 : f32
    %235 = vector.broadcast %cst_106 : f32 to vector<9x1xf32>
    %236 = arith.divf %234, %235 : vector<9x1xf32>
    %237 = vector.broadcast %236 : vector<9x1xf32> to vector<9x32xf32>
    %238 = arith.subf %228, %237 : vector<9x32xf32>
    %239 = arith.mulf %238, %238 : vector<9x32xf32>
    %cst_107 = arith.constant dense<0.000000e+00> : vector<9xf32>
    %240 = vector.multi_reduction <add>, %239, %cst_107 [1] : vector<9x32xf32> to vector<9xf32>
    %241 = vector.shape_cast %240 : vector<9xf32> to vector<9x1xf32>
    %cst_108 = arith.constant 3.200000e+01 : f32
    %242 = vector.broadcast %cst_108 : f32 to vector<9x1xf32>
    %243 = arith.divf %241, %242 : vector<9x1xf32>
    %cst_109 = arith.constant 9.99999974E-6 : f32
    %244 = vector.broadcast %cst_109 : f32 to vector<9x1xf32>
    %245 = arith.addf %243, %244 : vector<9x1xf32>
    %246 = math.rsqrt %245 : vector<9x1xf32>
    %247 = vector.broadcast %246 : vector<9x1xf32> to vector<9x32xf32>
    %248 = arith.mulf %238, %247 : vector<9x32xf32>
    %249 = vector.broadcast %230 : vector<1x32xf32> to vector<9x32xf32>
    %250 = arith.mulf %248, %249 : vector<9x32xf32>
    %251 = vector.broadcast %232 : vector<1x32xf32> to vector<9x32xf32>
    %252 = arith.addf %250, %251 : vector<9x32xf32>
    %c1_110 = arith.constant 1 : index
    %c0_111 = arith.constant 0 : index
    %c0_112 = arith.constant 0 : index
    %253 = vector.load %arg8[%c1_110, %c0_111, %c0_112] : memref<2x32x64xf32, #tpu.memory_space<vmem>>, vector<1x32x64xf32>
    %254 = vector.shape_cast %253 : vector<1x32x64xf32> to vector<32x64xf32>
    %cst_113 = arith.constant dense<0.000000e+00> : vector<9x64xf32>
    %255 = tpu.matmul %252, %254, %cst_113 {dimension_numbers = #tpu.dot_dimension_numbers<[1], [0], [0], [1], [0, 0, 1, 1], [], []>} : vector<9x32xf32>, vector<32x64xf32>, vector<9x64xf32> -> vector<9x64xf32>
    %c1_114 = arith.constant 1 : index
    %c0_115 = arith.constant 0 : index
    %c0_116 = arith.constant 0 : index
    %256 = vector.load %arg9[%c1_114, %c0_115, %c0_116] : memref<2x1x64xf32, #tpu.memory_space<vmem>>, vector<1x1x64xf32>
    %257 = vector.shape_cast %256 : vector<1x1x64xf32> to vector<1x64xf32>
    %258 = vector.broadcast %257 : vector<1x64xf32> to vector<9x64xf32>
    %259 = arith.addf %255, %258 : vector<9x64xf32>
    %cst_117 = arith.constant 0.000000e+00 : f32
    %260 = vector.broadcast %cst_117 : f32 to vector<9x64xf32>
    %261 = arith.maximumf %259, %260 : vector<9x64xf32>
    %c1_118 = arith.constant 1 : index
    %c0_119 = arith.constant 0 : index
    %c0_120 = arith.constant 0 : index
    %262 = vector.load %arg10[%c1_118, %c0_119, %c0_120] : memref<2x64x32xf32, #tpu.memory_space<vmem>>, vector<1x64x32xf32>
    %263 = vector.shape_cast %262 : vector<1x64x32xf32> to vector<64x32xf32>
    %cst_121 = arith.constant dense<0.000000e+00> : vector<9x32xf32>
    %264 = tpu.matmul %261, %263, %cst_121 {dimension_numbers = #tpu.dot_dimension_numbers<[1], [0], [0], [1], [0, 0, 1, 1], [], []>} : vector<9x64xf32>, vector<64x32xf32>, vector<9x32xf32> -> vector<9x32xf32>
    %c1_122 = arith.constant 1 : index
    %c0_123 = arith.constant 0 : index
    %c0_124 = arith.constant 0 : index
    %265 = vector.load %arg11[%c1_122, %c0_123, %c0_124] : memref<2x1x32xf32, #tpu.memory_space<vmem>>, vector<1x1x32xf32>
    %266 = vector.shape_cast %265 : vector<1x1x32xf32> to vector<1x32xf32>
    %267 = vector.broadcast %266 : vector<1x32xf32> to vector<9x32xf32>
    %268 = arith.addf %264, %267 : vector<9x32xf32>
    %269 = arith.addf %252, %268 : vector<9x32xf32>
    %c1_125 = arith.constant 1 : index
    %c0_126 = arith.constant 0 : index
    %c0_127 = arith.constant 0 : index
    %270 = vector.load %arg12[%c1_125, %c0_126, %c0_127] : memref<2x1x32xf32, #tpu.memory_space<vmem>>, vector<1x1x32xf32>
    %271 = vector.shape_cast %270 : vector<1x1x32xf32> to vector<1x32xf32>
    %c1_128 = arith.constant 1 : index
    %c0_129 = arith.constant 0 : index
    %c0_130 = arith.constant 0 : index
    %272 = vector.load %arg13[%c1_128, %c0_129, %c0_130] : memref<2x1x32xf32, #tpu.memory_space<vmem>>, vector<1x1x32xf32>
    %273 = vector.shape_cast %272 : vector<1x1x32xf32> to vector<1x32xf32>
    %cst_131 = arith.constant dense<0.000000e+00> : vector<9xf32>
    %274 = vector.multi_reduction <add>, %269, %cst_131 [1] : vector<9x32xf32> to vector<9xf32>
    %275 = vector.shape_cast %274 : vector<9xf32> to vector<9x1xf32>
    %cst_132 = arith.constant 3.200000e+01 : f32
    %276 = vector.broadcast %cst_132 : f32 to vector<9x1xf32>
    %277 = arith.divf %275, %276 : vector<9x1xf32>
    %278 = vector.broadcast %277 : vector<9x1xf32> to vector<9x32xf32>
    %279 = arith.subf %269, %278 : vector<9x32xf32>
    %280 = arith.mulf %279, %279 : vector<9x32xf32>
    %cst_133 = arith.constant dense<0.000000e+00> : vector<9xf32>
    %281 = vector.multi_reduction <add>, %280, %cst_133 [1] : vector<9x32xf32> to vector<9xf32>
    %282 = vector.shape_cast %281 : vector<9xf32> to vector<9x1xf32>
    %cst_134 = arith.constant 3.200000e+01 : f32
    %283 = vector.broadcast %cst_134 : f32 to vector<9x1xf32>
    %284 = arith.divf %282, %283 : vector<9x1xf32>
    %cst_135 = arith.constant 9.99999974E-6 : f32
    %285 = vector.broadcast %cst_135 : f32 to vector<9x1xf32>
    %286 = arith.addf %284, %285 : vector<9x1xf32>
    %287 = math.rsqrt %286 : vector<9x1xf32>
    %288 = vector.broadcast %287 : vector<9x1xf32> to vector<9x32xf32>
    %289 = arith.mulf %279, %288 : vector<9x32xf32>
    %290 = vector.broadcast %271 : vector<1x32xf32> to vector<9x32xf32>
    %291 = arith.mulf %289, %290 : vector<9x32xf32>
    %292 = vector.broadcast %273 : vector<1x32xf32> to vector<9x32xf32>
    %293 = arith.addf %291, %292 : vector<9x32xf32>
    %294 = vector.extract_strided_slice %293 {offsets = [0, 0], sizes = [1, 32], strides = [1, 1]} : vector<9x32xf32> to vector<1x32xf32>
    %c0_136 = arith.constant 0 : index
    %c0_137 = arith.constant 0 : index
    %295 = vector.load %arg14[%c0_136, %c0_137] : memref<32x16xf32, #tpu.memory_space<vmem>>, vector<32x16xf32>
    %cst_138 = arith.constant dense<0.000000e+00> : vector<1x16xf32>
    %296 = tpu.matmul %294, %295, %cst_138 {dimension_numbers = #tpu.dot_dimension_numbers<[1], [0], [0], [1], [0, 0, 1, 1], [], []>} : vector<1x32xf32>, vector<32x16xf32>, vector<1x16xf32> -> vector<1x16xf32>
    %c0_139 = arith.constant 0 : index
    %c0_140 = arith.constant 0 : index
    %297 = vector.load %arg15[%c0_139, %c0_140] : memref<1x16xf32, #tpu.memory_space<vmem>>, vector<1x16xf32>
    %298 = arith.addf %296, %297 : vector<1x16xf32>
    %cst_141 = arith.constant 0.000000e+00 : f32
    %299 = vector.broadcast %cst_141 : f32 to vector<1x16xf32>
    %300 = arith.maximumf %298, %299 : vector<1x16xf32>
    %c0_142 = arith.constant 0 : index
    %c0_143 = arith.constant 0 : index
    %301 = vector.load %arg16[%c0_142, %c0_143] : memref<16x3xf32, #tpu.memory_space<vmem>>, vector<16x3xf32>
    %cst_144 = arith.constant dense<0.000000e+00> : vector<1x3xf32>
    %302 = tpu.matmul %300, %301, %cst_144 {dimension_numbers = #tpu.dot_dimension_numbers<[1], [0], [0], [1], [0, 0, 1, 1], [], []>} : vector<1x16xf32>, vector<16x3xf32>, vector<1x3xf32> -> vector<1x3xf32>
    %c0_145 = arith.constant 0 : index
    %c0_146 = arith.constant 0 : index
    %303 = vector.load %arg17[%c0_145, %c0_146] : memref<1x3xf32, #tpu.memory_space<vmem>>, vector<1x3xf32>
    %304 = arith.addf %302, %303 : vector<1x3xf32>
    %c0_147 = arith.constant 0 : index
    %c0_148 = arith.constant 0 : index
    %c0_149 = arith.constant 0 : index
    %305 = vector.load %arg18[%c0_147, %c0_148, %c0_149] : memref<1x1x3xf32, #tpu.memory_space<vmem>>, vector<1x1x3xf32>
    %306 = vector.shape_cast %305 : vector<1x1x3xf32> to vector<1x3xf32>
    %307 = vector.shape_cast %304 : vector<1x3xf32> to vector<1x1x3xf32>
    tpu.vector_store %arg18[%c0_147, %c0_148, %c0_149], %307 {strides = array<i32>} : memref<1x1x3xf32, #tpu.memory_space<vmem>>, vector<1x1x3xf32>,
    return
  }
  func.func @transform_0(%arg0: i32) -> (i32, i32, i32) {
    %c0_i32 = arith.constant 0 : i32
    %c0_i32_0 = arith.constant 0 : i32
    %c0_i32_1 = arith.constant 0 : i32
    return %arg0, %c0_i32, %c0_i32_0 : i32, i32, i32
  }
  func.func @transform_1(%arg0: i32) -> (i32, i32, i32) {
    %c0_i32 = arith.constant 0 : i32
    %c0_i32_0 = arith.constant 0 : i32
    %c0_i32_1 = arith.constant 0 : i32
    %c0_i32_2 = arith.constant 0 : i32
    return %c0_i32, %c0_i32_0, %c0_i32_1 : i32, i32, i32
  }
  func.func @transform_2(%arg0: i32) -> (i32, i32, i32) {
    %c0_i32 = arith.constant 0 : i32
    %c0_i32_0 = arith.constant 0 : i32
    %c0_i32_1 = arith.constant 0 : i32
    %c0_i32_2 = arith.constant 0 : i32
    return %c0_i32, %c0_i32_0, %c0_i32_1 : i32, i32, i32
  }
  func.func @transform_3(%arg0: i32) -> (i32, i32, i32) {
    %c0_i32 = arith.constant 0 : i32
    %c0_i32_0 = arith.constant 0 : i32
    %c0_i32_1 = arith.constant 0 : i32
    %c0_i32_2 = arith.constant 0 : i32
    return %c0_i32, %c0_i32_0, %c0_i32_1 : i32, i32, i32
  }
  func.func @transform_4(%arg0: i32) -> (i32, i32, i32) {
    %c0_i32 = arith.constant 0 : i32
    %c0_i32_0 = arith.constant 0 : i32
    %c0_i32_1 = arith.constant 0 : i32
    %c0_i32_2 = arith.constant 0 : i32
    return %c0_i32, %c0_i32_0, %c0_i32_1 : i32, i32, i32
  }
  func.func @transform_5(%arg0: i32) -> (i32, i32, i32) {
    %c0_i32 = arith.constant 0 : i32
    %c0_i32_0 = arith.constant 0 : i32
    %c0_i32_1 = arith.constant 0 : i32
    %c0_i32_2 = arith.constant 0 : i32
    return %c0_i32, %c0_i32_0, %c0_i32_1 : i32, i32, i32
  }
  func.func @transform_6(%arg0: i32) -> (i32, i32, i32) {
    %c0_i32 = arith.constant 0 : i32
    %c0_i32_0 = arith.constant 0 : i32
    %c0_i32_1 = arith.constant 0 : i32
    %c0_i32_2 = arith.constant 0 : i32
    return %c0_i32, %c0_i32_0, %c0_i32_1 : i32, i32, i32
  }
  func.func @transform_7(%arg0: i32) -> (i32, i32, i32) {
    %c0_i32 = arith.constant 0 : i32
    %c0_i32_0 = arith.constant 0 : i32
    %c0_i32_1 = arith.constant 0 : i32
    %c0_i32_2 = arith.constant 0 : i32
    return %c0_i32, %c0_i32_0, %c0_i32_1 : i32, i32, i32
  }
  func.func @transform_8(%arg0: i32) -> (i32, i32, i32) {
    %c0_i32 = arith.constant 0 : i32
    %c0_i32_0 = arith.constant 0 : i32
    %c0_i32_1 = arith.constant 0 : i32
    %c0_i32_2 = arith.constant 0 : i32
    return %c0_i32, %c0_i32_0, %c0_i32_1 : i32, i32, i32
  }
  func.func @transform_9(%arg0: i32) -> (i32, i32, i32) {
    %c0_i32 = arith.constant 0 : i32
    %c0_i32_0 = arith.constant 0 : i32
    %c0_i32_1 = arith.constant 0 : i32
    %c0_i32_2 = arith.constant 0 : i32
    return %c0_i32, %c0_i32_0, %c0_i32_1 : i32, i32, i32
  }
  func.func @transform_10(%arg0: i32) -> (i32, i32, i32) {
    %c0_i32 = arith.constant 0 : i32
    %c0_i32_0 = arith.constant 0 : i32
    %c0_i32_1 = arith.constant 0 : i32
    %c0_i32_2 = arith.constant 0 : i32
    return %c0_i32, %c0_i32_0, %c0_i32_1 : i32, i32, i32
  }
  func.func @transform_11(%arg0: i32) -> (i32, i32, i32) {
    %c0_i32 = arith.constant 0 : i32
    %c0_i32_0 = arith.constant 0 : i32
    %c0_i32_1 = arith.constant 0 : i32
    %c0_i32_2 = arith.constant 0 : i32
    return %c0_i32, %c0_i32_0, %c0_i32_1 : i32, i32, i32
  }
  func.func @transform_12(%arg0: i32) -> (i32, i32, i32) {
    %c0_i32 = arith.constant 0 : i32
    %c0_i32_0 = arith.constant 0 : i32
    %c0_i32_1 = arith.constant 0 : i32
    %c0_i32_2 = arith.constant 0 : i32
    return %c0_i32, %c0_i32_0, %c0_i32_1 : i32, i32, i32
  }
  func.func @transform_13(%arg0: i32) -> (i32, i32) {
    %c0_i32 = arith.constant 0 : i32
    %c0_i32_0 = arith.constant 0 : i32
    %c0_i32_1 = arith.constant 0 : i32
    return %c0_i32, %c0_i32_0 : i32, i32
  }
  func.func @transform_14(%arg0: i32) -> (i32, i32) {
    %c0_i32 = arith.constant 0 : i32
    %c0_i32_0 = arith.constant 0 : i32
    %c0_i32_1 = arith.constant 0 : i32
    return %c0_i32, %c0_i32_0 : i32, i32
  }
  func.func @transform_15(%arg0: i32) -> (i32, i32) {
    %c0_i32 = arith.constant 0 : i32
    %c0_i32_0 = arith.constant 0 : i32
    %c0_i32_1 = arith.constant 0 : i32
    return %c0_i32, %c0_i32_0 : i32, i32
  }
  func.func @transform_16(%arg0: i32) -> (i32, i32) {
    %c0_i32 = arith.constant 0 : i32
    %c0_i32_0 = arith.constant 0 : i32
    %c0_i32_1 = arith.constant 0 : i32
    return %c0_i32, %c0_i32_0 : i32, i32
  }
  func.func @transform_17(%arg0: i32) -> (i32, i32, i32) {
    %c0_i32 = arith.constant 0 : i32
    %c0_i32_0 = arith.constant 0 : i32
    %c0_i32_1 = arith.constant 0 : i32
    return %arg0, %c0_i32, %c0_i32_0 : i32, i32, i32
  }
}

</mosaic_0001>

<bundles_post_ra>
// kernel: tpu_custom_call.1
= control target key start
LH: loop header
LB: loop body
LE: loop exit
PB: predicated region body
PF: predicated region fallthrough
CT: control target
= control target key end

     0   :  { %s5045_s0 = inlined_call_operand.vmem [shape: f32[2,9,32], index: 0, kind: input, shape index: {}]   ;;  %s5046_s1 = inlined_call_operand.vmem [shape: f32[2,32,96], index: 1, kind: input, shape index: {}]   ;;  %s5047_s2 = inlined_call_operand.vmem [shape: f32[2,1,96], index: 2, kind: input, shape index: {}]   ;;  %s5048_s3 = inlined_call_operand.vmem [shape: f32[2,32,32], index: 3, kind: input, shape index: {}]   ;;  %s5049_s4 = inlined_call_operand.vmem [shape: f32[2,1,32], index: 4, kind: input, shape index: {}]   ;;  %s5050_s5 = inlined_call_operand.vmem [shape: f32[2,1,32], index: 5, kind: input, shape index: {}]   ;;  %s5051_s6 = inlined_call_operand.vmem [shape: f32[2,1,32], index: 6, kind: input, shape index: {}]   ;;  %s5052_s7 = inlined_call_operand.vmem [shape: f32[2,32,64], index: 7, kind: input, shape index: {}]   ;;  %s5053_s8 = inlined_call_operand.vmem [shape: f32[2,1,64], index: 8, kind: input, shape index: {}]   ;;  %s5054_s9 = inlined_call_operand.vmem [shape: f32[2,64,32], index: 9, kind: input, shape index: {}]   ;;  %s5055_s10 = inlined_call_operand.vmem [shape: f32[2,1,32], index: 10, kind: input, shape index: {}]   ;;  %s5056_s11 = inlined_call_operand.vmem [shape: f32[2,1,32], index: 11, kind: input, shape index: {}]   ;;  %s5057_s12 = inlined_call_operand.vmem [shape: f32[2,1,32], index: 12, kind: input, shape index: {}]   ;;  %s5058_s13 = inlined_call_operand.vmem [shape: f32[32,16], index: 13, kind: input, shape index: {}]   ;;  %s5059_s14 = inlined_call_operand.vmem [shape: f32[1,16], index: 14, kind: input, shape index: {}]   ;;  %s5060_s15 = inlined_call_operand.vmem [shape: f32[16,3], index: 15, kind: input, shape index: {}]   ;;  %s5061_s16 = inlined_call_operand.vmem [shape: f32[1,3], index: 16, kind: input, shape index: {}]   ;;  %s5062_s17 = inlined_call_operand.hbm [shape: f32[2,1,3], index: 17, kind: output, shape index: {}]  }
   0x1   :  { %5089 = sst [smem:[#allocation10_spill]] %s5045_s0 }
   0x2   :  { %5090 = sst [smem:[#allocation11_spill]] %s5046_s1 }
   0x3   :  { %5091 = sst [smem:[#allocation12_spill]] %s5047_s2 }
   0x4   :  { %22 = vsyncpa [#allocation3], 0 }
   0x5   :  { %24 = vsyncpa [#allocation3 + $0x1], 0  ;;  %s4445_s24 = smov 0   ;;  %s4447_s25 = smov 0  }
   0x6   :  { %s4449_s26 = smov 0   ;;  %s4451_s27 = smov 0  }
   0x7 LB: > { %5092 = sst [smem:[#allocation5_spill]] %s4322_s24  ;;  %s4466_s28 = sadd.s32 4294967295, %s4334_s27   ;;  %s4334_s27 = sphi %s4451_s27, %s5122_s27   ;;  %s4330_s26 = sphi %s4449_s26, %s5124_s26   ;;  %s4326_s25 = sphi %s4447_s25, %s5126_s25   ;;  %s4322_s24 = sphi %s4445_s24, %s5125_s24  }
   0x8   : > { %5093 = sst [smem:[#allocation6_spill]] %s4330_s26  ;;  %s3382_s29 = sadd.s32 4294967294, %s4334_s27  }
   0x9   : > { %s4470_s0 = sadd.s32 1, %s4334_s27   ;;  %s399_s30 = sadd.s32 1, %s4330_s26 }
   0xa   : > { %5094 = sst [smem:[#allocation7_spill]] %s4470_s0  ;;  %s396_s18 = ssub.s32 %s4334_s27, %s4470_s0 }
   0xb   : > { %p409_p0 = scmp.ne.s32.totalorder %s4330_s26, %s4326_s25  ;;  %p397_p1 = scmp.eq.s32.totalorder %s396_s18, 0 }
   0xc   : > { %p410_p2 = scmp.eq.s32.totalorder %s4466_s28, 1  ;;  %p415_p3 = scmp.ne.s32.totalorder %s4326_s25, %s4322_s24 }
   0xd   : > { %p416_p4 = scmp.eq.s32.totalorder %s3382_s29, 1  ;;  %p3385_p7 = scmp.ge.s32.totalorder %s4334_s27, 1 }
   0xe   : > { %s4481_s19 = scalar_select %p397_p1, %s4330_s26, %s399_s30  }
   0xf   : > { %p4483_p5 = por %p410_p2, %p409_p0  ;;  %p4487_p6 = por %p416_p4, %p415_p3 }
  0x10   : > { %5095 = sst [smem:[#allocation8_spill]] %s4481_s19  ;;  %p490_p8 = scmp.lt.s32.totalorder %s4334_s27, 3 }
  0x11   : > { %s5097_s20 = scalar_select %p4487_p6, 1, 0 }
  0x12   : > { %p491_p9 = pnand %p3385_p7, %p490_p8 }
  0x13   : > { %5098 = sst [smem:[#allocation9_spill]] %s5097_s20  ;;  %s5099_s23 = sld [smem:[#allocation11_spill]] (!%p491_p9)  ;;  %vm559_vm0 = vcmask (!%p491_p9), 261120   ;;  %vm649_vm1 = vcmask (!%p491_p9), 64512   ;;  %vm739_vm3 = vcmask (!%p491_p9), 65536   ;;  %vm735_vm4 = vcmask (!%p491_p9), 72704  }
  0x14   : > { %494 = sbr.rel (%p491_p9) target bundleno = 7705 (0x1e19), region = 88  ;;  %p541_p10 = scmp.lt.s32.totalorder (!%p491_p9), %s4466_s28, 1  ;;  %vm4539_vm2 = vmpackc.low (!%p491_p9), %vm649_vm1, %vm649_vm1  ;;  %vm770_vm5 = vcmask (!%p491_p9), 1040384   ;;  %vm4340_vm6 = vmmov (!%p491_p9), 1   ;;  %vm1477_vm8 = vcmask (!%p491_p9), 130048   ;;  %vm1480_vm9 = vcmask (!%p491_p9), 195584  }
  0x15   : > { %s5100_s30 = sld [smem:[#allocation10_spill]] (!%p491_p9)  ;;  %s5101_s2 = sld [smem:[#allocation12_spill]] (!%p491_p9)  ;;  %vm4561_vm7 = vmpackc.low (!%p491_p9), %vm770_vm5, %vm4340_vm6  ;;  %vm1582_vm10 = vcmask (!%p491_p9), 253952   ;;  %vm1732_vm11 = vcmask (!%p491_p9), 523264   ;;  %v3470_v44 = vld [vmem:[%s5048_s3 + $0x30] sm:$0xff] (!%p491_p9)  ;;  %vm4352_vm12 = vmmov (!%p491_p9), 0  }
  0x16   : > { %s5087_s19 = smov (!%p491_p9), 96   ;;  %s5082_s18 = smov (!%p491_p9), 64   ;;  %vm3312_vm13 = vcmask (!%p491_p9), 16384  }
  0x17   : > { %s5080_s22 = smov (!%p491_p9), 56   ;;  %s5078_s29 = smov (!%p491_p9), 112  }
  0x18   : > { %s5070_s26 = smov (!%p491_p9), 104   ;;  %s5069_s0 = smov (!%p491_p9), 48  }
  0x19   : > { %v548_v0 = vld [vmem:[%s5099_s23] sm:$0xff] (!%p491_p9)  ;;  %v549_v1 = vld [vmem:[%s5099_s23 + $0x8] sm:$0xff] (!%p491_p9)  ;;  %v550_v2 = vld [vmem:[%s5099_s23 + $0x10] sm:$0xff] (!%p491_p9) }
  0x1a   : > { %v3872_v3 = vpack.c.bf16 (!%p491_p9), %v549_v1, %v548_v0  ;;  %v551_v4 = vld [vmem:[%s5099_s23 + $0x18] sm:$0xff] (!%p491_p9) }
  0x1b   : > { %v3876_v5 = vpack.c.bf16 %v551_v4, %v550_v2  ;;  %s542_s20 = scalar_select %p541_p10, %s4466_s28, 1  ;;  %v3388_v8 = vld [vmem:[%s5101_s2] ss:$0 sm:$0xff] }
  0x1c   : > { %3873 = vmatprep.subr.bf16.mxu0 %v3872_v3 }
  0x1d   : > { %3875 = vmatpush3.bf16.msra.mxu0 %v3872_v3  ;;  %s3509_s21 = sshll.u32 %s542_s20, 4  ;;  %s5088_s20 = smov 88  }
  0x1e   : > { %3877 = vmatprep.subr.bf16.mxu0 %v3876_v5  ;;  %s545_s24 = scalar_lea.vmem %s5100_s30, %s3509_s21  ;;  %s5081_s21 = smov 80  }
  0x1f   : > { %v4510_v6 = vld [vmem:[%s545_s24] sm:$0xff]  ;;  %v4514_v7 = vld [vmem:[%s545_s24 + $0x8] sm:$0x1]  ;;  %s5083_s24 = smov 120   ;;  %s5072_s30 = smov 72  }
  0x20   : > { %3646 = vmatprep.mubr.msk.f32.mxu0 %vm559_vm0, %v4510_v6 }
  0x21   : > { %3879 = vmatpush3.bf16.msra.mxu0 %v3876_v5 }
  0x24   : > { %3647 = vmatmul.mubr.msk.f32.vlgmr.msra.gmra.mrb[0].mxu0 %vm559_vm0, %v4514_v7 }
  0xf7   : > { %v3648_v9 = vpop.f32.mrb[0].mxu0 }
  0xf8   : > { %v638_v10 = vadd.f32 %v3648_v9, %v3388_v8  ;;  %v632_v11 = vpop.f32.mrb[1].mxu0 }
  0xf9   : > { %v633_v12 = vadd.f32 %v3388_v8, %v632_v11 }
  0xfa   : > { %v4531_v15 = vmul.f32 0.35355338, %v638_v10 }
  0xfb   : > { %v4521_v13 = vpack.i.bf16 %v638_v10, %v633_v12  ;;  %v4523_v14 = vmul.f32 0.35355338, %v633_v12 }
  0xfd   : > { %4115 = vrot.lane.b32.xlu0 %v4521_v13, %s5087_s19  ;;  %848 = vrot.lane.b32.xlu1 %v4523_v14, %s5083_s24  ;;  %s5110_s19 = smov 80  }
  0xfe   : > { %3653 = vmatprep.mubr.msk.f32.mxu1 %vm649_vm1, %v4523_v14 }
 0x101   : > { %4120 = vrot.lane.b32.xlu0 %v4521_v13, %s5088_s20  ;;  %850 = vrot.lane.b32.xlu1 %v4531_v15, %s5083_s24  ;;  %s5111_s20 = smov 56   ;;  %s5115_s24 = smov 48  }
 0x16f   : > { %v4116_v16 = vpop.permute.xlu0 %4115  ;;  %v849_v25 = vpop.permute.xlu1 %848 }
 0x170   : > { %v4118_v17 = vunpack.i.h.bf16 %v4116_v16  ;;  %v4117_v18 = vunpack.i.l.bf16 %v4116_v16 }
 0x172   : > { %v3880_v20 = vpack.c.bf16 %v4118_v17, %v4117_v18 }
 0x173   : > { %v4121_v21 = vpop.permute.xlu0 %4120  ;;  %v851_v26 = vpop.permute.xlu1 %850 }
 0x174   : > { %v4123_v22 = vunpack.i.h.bf16 %v4121_v21  ;;  %v4122_v23 = vunpack.i.l.bf16 %v4121_v21  ;;  %3882 = vmatprep.subr.msk.bf16.mxu1 %vm4539_vm2, %v3880_v20 }
 0x175   : > { %3885 = vmatpush3.bf16.xpose.msk.msra.mxu1 %vm4539_vm2, %v3880_v20 }
 0x176   : > { %v3892_v24 = vpack.c.bf16 %v4123_v22, %v4122_v23 }
 0x178   : > { %3894 = vmatprep.subr.msk.bf16.mxu1 %vm4539_vm2, %v3892_v24 }
 0x17c   : > { %3654 = vmatmul.mubr.msk.f32.vlgmr.msra.gmra.mrb[0].mxu1 %vm649_vm1, %v4531_v15 }
 0x17d   : > { %3897 = vmatpush3.bf16.xpose.msk.msra.mxu1 %vm4539_vm2, %v3892_v24  ;;  %3667 = vmatprep.mubr.msk.f32.mxu1 %vm649_vm1, %v849_v25 }
 0x184   : > { %3668 = vmatmul.mubr.msk.f32.vlgmr.msra.gmra.mrb[2].mxu1 %vm649_vm1, %v851_v26 }
 0x24f   : > { %v3655_v27 = vpop.f32.mrb[0].mxu1 }
 0x250   : > { %v726_v28 = vpop.f32.mrb[1].mxu1  ;;  %v740_v29 = vsel %vm739_vm3, %v3655_v27, -inf }
 0x251   : > { %741 = vmax.xlane.f32.xlu1 %v740_v29  ;;  %v736_v30 = vsel %vm735_vm4, %v726_v28, -inf }
 0x252   : > { %737 = vmax.xlane.f32.xlu0 %v736_v30 }
 0x257   : > { %v3669_v31 = vpop.f32.mrb[2].mxu1 }
 0x258   : > { %v930_v32 = vpop.f32.mrb[3].mxu1  ;;  %v942_v34 = vsel %vm739_vm3, %v3669_v31, -inf }
 0x259   : > { %v939_v33 = vsel %vm735_vm4, %v930_v32, -inf }
 0x25a   : > { %940 = vmax.xlane.f32.xlu0 %v939_v33 }
 0x25e   : > { %943 = vmax.xlane.f32.xlu0 %v942_v34 }
 0x262   : > { %4125 = vrot.lane.b32.xlu1 %v4521_v13, %s5082_s18  ;;  %s5107_s18 = smov 96  }
 0x2de   : > { %v742_v35 = vpop.xlane.xlu1 %741 }
 0x2df   : > { %v744_v36 = vsub.f32 %v3655_v27, %v742_v35  ;;  %v738_v37 = vpop.xlane.xlu0 %737 }
 0x2e0   : > { %v743_v38 = vsub.f32 %v726_v28, %v738_v37 }
 0x2e1   : > { %v747_v39 = vmul.f32 1.442695, %v744_v36 }
 0x2e2   : > { %v745_v40 = vmul.f32 1.442695, %v743_v38  ;;  %v4126_v41 = vpop.permute.xlu1 %4125 }
 0x2e3   : > { %4194 = vpow2.f32 %v747_v39  ;;  %v4128_v42 = vunpack.i.h.bf16 %v4126_v41  ;;  %v4127_v43 = vunpack.i.l.bf16 %v4126_v41 }
 0x2e4   : > { %4196 = vpow2.f32 %v745_v40 }
 0x2e5   : > { %v3886_v45 = vpack.c.bf16 %v4128_v42, %v4127_v43 }
 0x2e7   : > { %3888 = vmatprep.subr.msk.bf16.mxu0 %vm4561_vm7, %v3886_v45  ;;  %v941_v46 = vpop.xlane.xlu0 %940 }
 0x2e8   : > { %3891 = vmatpush3.bf16.msk.msra.mxu0 %vm4561_vm7, %v3886_v45  ;;  %v945_v56 = vsub.f32 %v930_v32, %v941_v46 }
 0x2ea   : > { %v947_v57 = vmul.f32 1.442695, %v945_v56 }
 0x2eb   : > { %v944_v47 = vpop.xlane.xlu0 %943 }
 0x2ec   : > { %v946_v48 = vsub.f32 %v3669_v31, %v944_v47 }
 0x2ed   : > { %v4195_v49 = vpop.eup %4194 }
 0x2ee   : > { %v4197_v50 = vpop.eup %4196  ;;  %v949_v51 = vmul.f32 1.442695, %v946_v48  ;;  %v752_v52 = vsel %vm739_vm3, %v4195_v49, 0.0 }
 0x2ef   : > { %753 = vadd.xlane.f32.xlu0 %v752_v52  ;;  %v749_v53 = vsel %vm735_vm4, %v4197_v50, 0.0 }
 0x2f0   : > { %4198 = vpow2.f32 %v949_v51  ;;  %750 = vadd.xlane.f32.xlu1 %v749_v53 }
 0x2f1   : > { %4200 = vpow2.f32 %v947_v57 }
 0x2fa   : > { %v4199_v54 = vpop.eup %4198 }
 0x2fb   : > { %v954_v55 = vsel %vm739_vm3, %v4199_v54, 0.0  ;;  %v4201_v58 = vpop.eup %4200 }
 0x2fc   : > { %955 = vadd.xlane.f32.xlu0 %v954_v55  ;;  %v951_v59 = vsel %vm735_vm4, %v4201_v58, 0.0 }
 0x301   : > { %4135 = vrot.lane.b32.xlu1 %v4521_v13, %s5081_s21  ;;  %s5108_s21 = smov 120  }
 0x312   : > { %4130 = vrot.lane.b32.xlu0 %v4521_v13, %s5080_s22  ;;  %s5109_s22 = smov 64  }
 0x316   : > { %1051 = vrot.lane.b32.xlu0 %v4531_v15, %s5078_s29 }
 0x325   : > { %952 = vadd.xlane.f32.xlu1 %v951_v59 }
 0x336   : > { %1049 = vrot.lane.b32.xlu1 %v4523_v14, %s5078_s29  ;;  %s5112_s29 = smov 112  }
 0x37c   : > { %v754_v60 = vpop.xlane.xlu0 %753 }
 0x37d   : > { %4202 = vrcp.f32 %v754_v60  ;;  %v751_v61 = vpop.xlane.xlu1 %750 }
 0x37e   : > { %4204 = vrcp.f32 %v751_v61 }
 0x381   : > { %v4136_v3 = vpop.permute.xlu1 %4135 }
 0x382   : > { %v4138_v5 = vunpack.i.h.bf16 %v4136_v3  ;;  %v4137_v8 = vunpack.i.l.bf16 %v4136_v3 }
 0x384   : > { %v3904_v12 = vpack.c.bf16 %v4138_v5, %v4137_v8 }
 0x387   : > { %v4203_v62 = vpop.eup %4202 }
 0x388   : > { %v4205_v63 = vpop.eup %4204  ;;  %v758_v2 = vmul.f32 %v4203_v62, %v4195_v49 }
 0x389   : > { %v956_v0 = vpop.xlane.xlu0 %955  ;;  %v757_v1 = vmul.f32 %v4205_v63, %v4197_v50 }
 0x38a   : > { %4206 = vrcp.f32 %v956_v0 }
 0x38b   : > { %3660 = vmatprep.mubr.msk.f32.mxu0 %vm735_vm4, %v757_v1 }
 0x38c   : > { %3661 = vmatmul.mubr.msk.f32.vlgmr.msra.gmra.mrb[2].mxu0 %vm735_vm4, %v758_v2 }
 0x38d   : > { %v4131_v4 = vpop.permute.xlu0 %4130 }
 0x38e   : > { %v4133_v9 = vunpack.i.h.bf16 %v4131_v4  ;;  %v4132_v10 = vunpack.i.l.bf16 %v4131_v4 }
 0x390   : > { %v3898_v11 = vpack.c.bf16 %v4133_v9, %v4132_v10 }
 0x391   : > { %v1052_v23 = vpop.permute.xlu0 %1051 }
 0x392   : > { %3900 = vmatprep.subr.msk.bf16.mxu0 %vm4561_vm7, %v3898_v11 }
 0x393   : > { %3903 = vmatpush3.bf16.msk.msra.mxu0 %vm4561_vm7, %v3898_v11 }
 0x394   : > { %3906 = vmatprep.subr.msk.bf16.mxu0 %vm4539_vm2, %v3904_v12  ;;  %v4207_v17 = vpop.eup %4206 }
 0x395   : > { %v960_v21 = vmul.f32 %v4207_v17, %v4199_v54 }
 0x3b2   : > { %v953_v16 = vpop.xlane.xlu1 %952 }
 0x3b3   : > { %4208 = vrcp.f32 %v953_v16 }
 0x3b6   : > { %v1050_v22 = vpop.permute.xlu1 %1049 }
 0x3bd   : > { %v4209_v18 = vpop.eup %4208 }
 0x3be   : > { %v959_v20 = vmul.f32 %v4209_v18, %v4201_v58 }
 0x3c0   : > { %3674 = vmatprep.mubr.msk.f32.mxu0 %vm735_vm4, %v959_v20 }
 0x3c1   : > { %3675 = vmatmul.mubr.msk.f32.vlgmr.msra.gmra.mrb[4].mxu0 %vm735_vm4, %v960_v21 }
 0x3c2   : > { %3909 = vmatpush3.bf16.xpose.msk.msra.mxu0 %vm4539_vm2, %v3904_v12  ;;  %3681 = vmatprep.mubr.msk.f32.mxu0 %vm649_vm1, %v1050_v22 }
 0x3c9   : > { %3682 = vmatmul.mubr.msk.f32.vlgmr.msra.gmra.mrb[6].mxu0 %vm649_vm1, %v1052_v23 }
 0x45f   : > { %v4595_v24 = vpop.f32.mrb[2].mxu0 }
 0x460   : > { %v4597_v25 = vpop.f32.mrb[3].mxu0 }
 0x494   : > { %v4599_v26 = vpop.f32.mrb[4].mxu0 }
 0x495   : > { %v4601_v27 = vpop.f32.mrb[5].mxu0 }
 0x49c   : > { %v3683_v28 = vpop.f32.mrb[6].mxu0 }
 0x49d   : > { %v1131_v29 = vpop.f32.mrb[7].mxu0  ;;  %v1143_v30 = vsel %vm739_vm3, %v3683_v28, -inf }
 0x49e   : > { %1144 = vmax.xlane.f32.xlu0 %v1143_v30  ;;  %v1140_v31 = vsel %vm735_vm4, %v1131_v29, -inf  ;;  %v1486_v30 = vld [vmem:[%s5048_s3 + $0x18] sm:$0xff] }
 0x49f   : > { %1141 = vmax.xlane.f32.xlu1 %v1140_v31 }
 0x52b   : > { %v1145_v32 = vpop.xlane.xlu0 %1144 }
 0x52c   : > { %v1147_v33 = vsub.f32 %v3683_v28, %v1145_v32  ;;  %v1142_v34 = vpop.xlane.xlu1 %1141  ;;  %v1485_v28 = vld [vmem:[%s5048_s3 + $0x10] sm:$0xff] }
 0x52d   : > { %v1146_v35 = vsub.f32 %v1131_v29, %v1142_v34  ;;  %v3932_v31 = vpack.c.bf16 %v1486_v30, %v1485_v28 }
 0x52e   : > { %v1150_v36 = vmul.f32 1.442695, %v1147_v33 }
 0x52f   : > { %v1148_v37 = vmul.f32 1.442695, %v1146_v35 }
 0x530   : > { %4210 = vpow2.f32 %v1150_v36 }
 0x531   : > { %4212 = vpow2.f32 %v1148_v37 }
 0x53a   : > { %v4211_v38 = vpop.eup %4210 }
 0x53b   : > { %v4213_v39 = vpop.eup %4212  ;;  %v1155_v40 = vsel %vm739_vm3, %v4211_v38, 0.0 }
 0x53c   : > { %1156 = vadd.xlane.f32.xlu1 %v1155_v40  ;;  %v1152_v41 = vsel %vm735_vm4, %v4213_v39, 0.0 }
 0x53d   : > { %1153 = vadd.xlane.f32.xlu0 %v1152_v41 }
 0x54d   : > { %4145 = vrot.lane.b32.xlu1 %v4521_v13, %s5072_s30  ;;  %s5073_s30 = smov 16  }
 0x551   : > { %1250 = vrot.lane.b32.xlu1 %v4523_v14, %s5070_s26 }
 0x553   : > { %4140 = vrot.lane.b32.xlu0 %v4521_v13, %s5069_s0  ;;  %s5076_s0 = smov 8  }
 0x557   : > { %1252 = vrot.lane.b32.xlu0 %v4531_v15, %s5070_s26  ;;  %s5075_s26 = smov 40  }
 0x5c9   : > { %v1157_v42 = vpop.xlane.xlu1 %1156 }
 0x5ca   : > { %4214 = vrcp.f32 %v1157_v42  ;;  %v1154_v43 = vpop.xlane.xlu0 %1153 }
 0x5cb   : > { %4216 = vrcp.f32 %v1154_v43 }
 0x5cd   : > { %v4146_v45 = vpop.permute.xlu1 %4145 }
 0x5ce   : > { %v4141_v46 = vpop.permute.xlu0 %4140  ;;  %v4148_v47 = vunpack.i.h.bf16 %v4146_v45  ;;  %v4147_v48 = vunpack.i.l.bf16 %v4146_v45 }
 0x5cf   : > { %v4143_v49 = vunpack.i.h.bf16 %v4141_v46  ;;  %v4142_v50 = vunpack.i.l.bf16 %v4141_v46 }
 0x5d0   : > { %v3916_v52 = vpack.c.bf16 %v4148_v47, %v4147_v48 }
 0x5d1   : > { %v3910_v51 = vpack.c.bf16 %v4143_v49, %v4142_v50  ;;  %v1251_v55 = vpop.permute.xlu1 %1250 }
 0x5d2   : > { %v1253_v56 = vpop.permute.xlu0 %1252 }
 0x5d3   : > { %3912 = vmatprep.subr.msk.bf16.mxu1 %vm4561_vm7, %v3910_v51 }
 0x5d4   : > { %v4215_v14 = vpop.eup %4214  ;;  %3915 = vmatpush3.bf16.msk.msra.mxu1 %vm4561_vm7, %v3910_v51 }
 0x5d5   : > { %v4217_v15 = vpop.eup %4216  ;;  %3918 = vmatprep.subr.msk.bf16.mxu1 %vm4539_vm2, %v3916_v52  ;;  %v1161_v54 = vmul.f32 %v4215_v14, %v4211_v38 }
 0x5d6   : > { %v1160_v53 = vmul.f32 %v4217_v15, %v4213_v39 }
 0x5d8   : > { %3688 = vmatprep.mubr.msk.f32.mxu1 %vm735_vm4, %v1160_v53 }
 0x5d9   : > { %3689 = vmatmul.mubr.msk.f32.vlgmr.msra.gmra.mrb[4].mxu1 %vm735_vm4, %v1161_v54 }
 0x5da   : > { %3695 = vmatprep.mubr.msk.f32.mxu1 %vm649_vm1, %v1251_v55 }
 0x5dd   : > { %3921 = vmatpush3.bf16.xpose.msk.msra.mxu1 %vm4539_vm2, %v3916_v52 }
 0x5e4   : > { %3696 = vmatmul.mubr.msk.f32.vlgmr.msra.gmra.mrb[6].mxu1 %vm649_vm1, %v1253_v56 }
 0x6ac   : > { %v3690_v57 = vpop.f32.mrb[4].mxu1 }
 0x6ad   : > { %v1241_v58 = vpop.f32.mrb[5].mxu1 }
 0x6b7   : > { %v3697_v59 = vpop.f32.mrb[6].mxu1 }
 0x6b8   : > { %v1332_v60 = vpop.f32.mrb[7].mxu1  ;;  %v1344_v61 = vsel %vm739_vm3, %v3697_v59, -inf }
 0x6b9   : > { %1345 = vmax.xlane.f32.xlu0 %v1344_v61  ;;  %v1341_v62 = vsel %vm735_vm4, %v1332_v60, -inf  ;;  %v1624_v61 = vld [vmem:[%s5052_s7 + $0x8] sm:$0xff] }
 0x6ba   : > { %1342 = vmax.xlane.f32.xlu1 %v1341_v62 }
 0x746   : > { %v1346_v63 = vpop.xlane.xlu0 %1345 }
 0x747   : > { %v1348_v0 = vsub.f32 %v3697_v59, %v1346_v63  ;;  %v1343_v1 = vpop.xlane.xlu1 %1342  ;;  %v1625_v63 = vld [vmem:[%s5052_s7 + $0x10] sm:$0xff] }
 0x748   : > { %v1347_v2 = vsub.f32 %v1332_v60, %v1343_v1 }
 0x749   : > { %v1351_v3 = vmul.f32 1.442695, %v1348_v0  ;;  %v1626_v0 = vld [vmem:[%s5052_s7 + $0x18] sm:$0xff] }
 0x74a   : > { %v1349_v4 = vmul.f32 1.442695, %v1347_v2  ;;  %v3940_v1 = vpack.c.bf16 %v1626_v0, %v1625_v63  ;;  %v1717_v2 = vld [vmem:[%s5054_s9] sm:$0xff] }
 0x74b   : > { %4218 = vpow2.f32 %v1351_v3  ;;  %v1718_v3 = vld [vmem:[%s5054_s9 + $0x8] sm:$0xff] }
 0x74c   : > { %4220 = vpow2.f32 %v1349_v4  ;;  %v1719_v4 = vld [vmem:[%s5054_s9 + $0x10] sm:$0xff] }
 0x755   : > { %v4219_v5 = vpop.eup %4218 }
 0x756   : > { %v4221_v8 = vpop.eup %4220  ;;  %v1356_v9 = vsel %vm739_vm3, %v4219_v5, 0.0 }
 0x757   : > { %1357 = vadd.xlane.f32.xlu1 %v1356_v9  ;;  %v1353_v10 = vsel %vm735_vm4, %v4221_v8, 0.0 }
 0x758   : > { %1354 = vadd.xlane.f32.xlu0 %v1353_v10  ;;  %v1721_v10 = vld [vmem:[%s5054_s9 + $0x20] sm:$0xff] }
 0x768   : > { %1453 = vrot.lane.b32.xlu1 %v4601_v27, %s5076_s0  ;;  %v1484_v27 = vld [vmem:[%s5048_s3 + $0x8] sm:$0xff] }
 0x76c   : > { %1455 = vrot.lane.b32.xlu1 %v4599_v26, %s5076_s0  ;;  %v1483_v26 = vld [vmem:[%s5048_s3] sm:$0xff]  ;;  %s5114_s0 = smov 104  }
 0x76d   : > { %v3928_v29 = vpack.c.bf16 %v1484_v27, %v1483_v26  ;;  %v3423_v27 = vld [vmem:[%s5051_s6] ss:$0 sm:$0xff] }
 0x76e   : > { %4150 = vrot.lane.b32.xlu0 %v4521_v13, %s5075_s26  ;;  %s5113_s26 = smov 72  }
 0x770   : > { %1463 = vrot.lane.b32.xlu1 %v3690_v57, %s5073_s30 }
 0x772   : > { %1461 = vrot.lane.b32.xlu0 %v1241_v58, %s5073_s30  ;;  %s5085_s30 = smov 24  }
 0x7e4   : > { %v1358_v11 = vpop.xlane.xlu1 %1357 }
 0x7e5   : > { %4222 = vrcp.f32 %v1358_v11  ;;  %v1355_v12 = vpop.xlane.xlu0 %1354  ;;  %v1722_v11 = vld [vmem:[%s5054_s9 + $0x28] sm:$0xff] }
 0x7e6   : > { %4224 = vrcp.f32 %v1355_v12  ;;  %v3952_v12 = vpack.c.bf16 %v1722_v11, %v1721_v10 }
 0x7e8   : > { %v1454_v34 = vpop.permute.xlu1 %1453 }
 0x7e9   : > { %v4151_v16 = vpop.permute.xlu0 %4150  ;;  %v1475_v38 = vsel %vm649_vm1, %v4597_v25, %v1454_v34  ;;  %v3419_v25 = vld [vmem:[%s5049_s4] ss:$0 sm:$0xff]  ;;  %v1723_v34 = vld [vmem:[%s5054_s9 + $0x30] sm:$0xff] }
 0x7ea   : > { %v4153_v17 = vunpack.i.h.bf16 %v4151_v16  ;;  %v4152_v18 = vunpack.i.l.bf16 %v4151_v16 }
 0x7ec   : > { %v3922_v20 = vpack.c.bf16 %v4153_v17, %v4152_v18  ;;  %v1456_v35 = vpop.permute.xlu1 %1455 }
 0x7ed   : > { %v1462_v37 = vpop.permute.xlu0 %1461  ;;  %v1476_v40 = vsel %vm649_vm1, %v4595_v24, %v1456_v35  ;;  %v1724_v35 = vld [vmem:[%s5054_s9 + $0x38] sm:$0xff] }
 0x7ee   : > { %3924 = vmatprep.subr.msk.bf16.mxu0 %vm4561_vm7, %v3922_v20  ;;  %v1478_v41 = vsel %vm1477_vm8, %v1475_v38, %v1462_v37  ;;  %v3424_v37 = vld [vmem:[%s5053_s8] ss:$0 sm:$0xff] }
 0x7ef   : > { %v4223_v21 = vpop.eup %4222  ;;  %3927 = vmatpush3.bf16.msk.msra.mxu0 %vm4561_vm7, %v3922_v20 }
 0x7f0   : > { %v4225_v13 = vpop.eup %4224  ;;  %v1362_v23 = vmul.f32 %v4223_v21, %v4219_v5  ;;  %3929 = vmatprep.subr.bf16.mxu0 %v3928_v29  ;;  %v1464_v36 = vpop.permute.xlu1 %1463  ;;  %v3944_v5 = vpack.c.bf16 %v1718_v3, %v1717_v2 }
 0x7f1   : > { %v1361_v22 = vmul.f32 %v4225_v13, %v4221_v8  ;;  %v1479_v43 = vsel %vm1477_vm8, %v1476_v40, %v1464_v36  ;;  %v1720_v8 = vld [vmem:[%s5054_s9 + $0x18] sm:$0xff]  ;;  %v3956_v36 = vpack.c.bf16 %v1724_v35, %v1723_v34 }
 0x7f2   : > { %v3948_v9 = vpack.c.bf16 %v1720_v8, %v1719_v4 }
 0x7f3   : > { %3702 = vmatprep.mubr.msk.f32.mxu0 %vm735_vm4, %v1361_v22 }
 0x7f4   : > { %3703 = vmatmul.mubr.msk.f32.vlgmr.msra.gmra.mrb[8].mxu0 %vm735_vm4, %v1362_v23  ;;  %v3422_v23 = vld [vmem:[%s5050_s5] ss:$0 sm:$0xff] }
 0x7f5   : > { %3931 = vmatpush3.bf16.msra.mxu0 %v3928_v29 }
 0x7f6   : > { %3933 = vmatprep.subr.bf16.mxu0 %v3932_v31 }
 0x7f9   : > { %3935 = vmatpush3.bf16.msra.mxu0 %v3932_v31 }
 0x7fa   : > { %3945 = vmatprep.subr.bf16.mxu0 %v3944_v5 }
 0x8c7   : > { %v3704_v32 = vpop.f32.mrb[8].mxu0 }
 0x8c8   : > { %1471 = vrot.lane.b32.xlu1 %v3704_v32, %s5085_s30  ;;  %v1442_v33 = vpop.f32.mrb[9].mxu0 }
 0x8c9   : > { %1469 = vrot.lane.b32.xlu0 %v1442_v33, %s5085_s30  ;;  %s5106_s30 = smov 88  }
 0x93a   : > { %v1472_v39 = vpop.permute.xlu1 %1471 }
 0x93b   : > { %v1470_v42 = vpop.permute.xlu0 %1469  ;;  %v1482_v46 = vsel %vm1480_vm9, %v1479_v43, %v1472_v39 }
 0x93c   : > { %v1481_v45 = vsel %vm1480_vm9, %v1478_v41, %v1470_v42 }
 0x93d   : > { %3713 = vmatprep.mubr.msk.f32.mxu0 %vm559_vm0, %v1481_v45  ;;  %v3427_v45 = vld [vmem:[%s5055_s10] ss:$0 sm:$0xff] }
 0x93e   : > { %3714 = vmatmul.mubr.msk.f32.vlgmr.msra.gmra.mrb[10].mxu0 %vm559_vm0, %v1482_v46 }
 0x93f   : > { %3947 = vmatpush3.bf16.msra.mxu0 %v3944_v5 }
 0x940   : > { %3949 = vmatprep.subr.bf16.mxu0 %v3948_v9 }
 0x943   : > { %3951 = vmatpush3.bf16.msra.mxu0 %v3948_v9  ;;  %v3430_v9 = vld [vmem:[%s5056_s11] ss:$0 sm:$0xff] }
 0x944   : > { %3953 = vmatprep.subr.bf16.mxu0 %v3952_v12 }
 0x947   : > { %3955 = vmatpush3.bf16.msra.mxu0 %v3952_v12 }
 0x948   : > { %3957 = vmatprep.subr.bf16.mxu0 %v3956_v36 }
 0x94b   : > { %3959 = vmatpush3.bf16.msra.mxu0 %v3956_v36 }
 0xa11   : > { %v3715_v47 = vpop.f32.mrb[10].mxu0 }
 0xa12   : > { %v1572_v48 = vadd.f32 %v3715_v47, %v3419_v25  ;;  %v1566_v24 = vpop.f32.mrb[11].mxu0 }
 0xa13   : > { %v1567_v49 = vadd.f32 %v3419_v25, %v1566_v24 }
 0xa14   : > { %v1576_v50 = vadd.f32 %v1572_v48, %v4514_v7 }
 0xa15   : > { %v1575_v51 = vadd.f32 %v1567_v49, %v4510_v6  ;;  %v1623_v6 = vld [vmem:[%s5052_s7] sm:$0xff] }
 0xa16   : > { %v1583_v52 = vsel %vm1582_vm10, %v1576_v50, 0.0  ;;  %v3936_v62 = vpack.c.bf16 %v1624_v61, %v1623_v6  ;;  %v3434_v61 = vld [vmem:[%s5099_s23 + $0x30] sm:$0xff] }
 0xa17   : > { %1584 = vadd.xlane.f32.xlu1 %v1583_v52  ;;  %v1579_v14 = vsel %vm559_vm0, %v1575_v51, 0.0 }
 0xa18   : > { %1580 = vadd.xlane.f32.xlu0 %v1579_v14  ;;  %3937 = vmatprep.subr.bf16.mxu1 %v3936_v62 }
 0xa19   : > { %3939 = vmatpush3.bf16.msra.mxu1 %v3936_v62  ;;  %v3435_v62 = vld [vmem:[%s5099_s23 + $0x38] sm:$0xff] }
 0xa1a   : > { %3941 = vmatprep.subr.bf16.mxu1 %v3940_v1  ;;  %v3964_v63 = vpack.c.bf16 %v3435_v62, %v3434_v61 }
 0xa1d   : > { %3943 = vmatpush3.bf16.msra.mxu1 %v3940_v1 }
 0xaa4   : > { %v1585_v15 = vpop.xlane.xlu1 %1584 }
 0xaa5   : > { %v1588_v53 = vmul.f32 0.03125, %v1585_v15  ;;  %v1581_v54 = vpop.xlane.xlu0 %1580 }
 0xaa6   : > { %v1587_v55 = vmul.f32 0.03125, %v1581_v54 }
 0xaa7   : > { %v1590_v56 = vsub.f32 %v1576_v50, %v1588_v53 }
 0xaa8   : > { %v1589_v57 = vsub.f32 %v1575_v51, %v1587_v55 }
 0xaa9   : > { %v1592_v60 = vmul.f32 %v1590_v56, %v1590_v56 }
 0xaaa   : > { %v1591_v58 = vmul.f32 %v1589_v57, %v1589_v57 }
 0xaab   : > { %v1596_v7 = vsel %vm1582_vm10, %v1592_v60, 0.0  ;;  %v3432_v60 = vld [vmem:[%s5099_s23 + $0x20] sm:$0xff] }
 0xaac   : > { %v1593_v59 = vsel %vm559_vm0, %v1591_v58, 0.0 }
 0xaad   : > { %1594 = vadd.xlane.f32.xlu0 %v1593_v59 }
 0xab1   : > { %1597 = vadd.xlane.f32.xlu0 %v1596_v7  ;;  %v3433_v7 = vld [vmem:[%s5099_s23 + $0x28] sm:$0xff] }
 0xab2   : > { %v3960_v6 = vpack.c.bf16 %v3433_v7, %v3432_v60 }
 0xab4   : > { %3961 = vmatprep.subr.bf16.mxu1 %v3960_v6 }
 0xb3a   : > { %v1595_v16 = vpop.xlane.xlu0 %1594 }
 0xb3b   : > { %v1599_v17 = vmul.f32 0.03125, %v1595_v16  ;;  %v3431_v16 = vld [vmem:[%s5057_s12] ss:$0 sm:$0xff] }
 0xb3d   : > { %v1601_v18 = vadd.f32 1e-05, %v1599_v17 }
 0xb3e   : > { %v1598_v20 = vpop.xlane.xlu0 %1597 }
 0xb3f   : > { %4226 = vrsqrt.f32 %v1601_v18  ;;  %v1600_v21 = vmul.f32 0.03125, %v1598_v20 }
 0xb41   : > { %v1602_v13 = vadd.f32 1e-05, %v1600_v21 }
 0xb43   : > { %4228 = vrsqrt.f32 %v1602_v13  ;;  %v3437_v13 = vld [vmem:[%s5101_s2 + $0x1] ss:$0 sm:$0xff] }
 0xb49   : > { %v4227_v22 = vpop.eup %4226 }
 0xb4a   : > { %v1605_v26 = vmul.f32 %v4227_v22, %v1589_v57 }
 0xb4c   : > { %v1613_v28 = vmul.f32 %v3422_v23, %v1605_v26 }
 0xb4d   : > { %v4229_v29 = vpop.eup %4228 }
 0xb4e   : > { %v1606_v30 = vmul.f32 %v4229_v29, %v1590_v56  ;;  %v1621_v31 = vadd.f32 %v3423_v27, %v1613_v28 }
 0xb50   : > { %v1614_v32 = vmul.f32 %v3422_v23, %v1606_v30  ;;  %3724 = vmatprep.mubr.msk.f32.mxu1 %vm559_vm0, %v1621_v31 }
 0xb52   : > { %v1622_v33 = vadd.f32 %v3423_v27, %v1614_v32 }
 0xb54   : > { %3725 = vmatmul.mubr.msk.f32.vlgmr.msra.gmra.mrb[8].mxu1 %vm559_vm0, %v1622_v33 }
 0xb55   : > { %3963 = vmatpush3.bf16.msra.mxu1 %v3960_v6 }
 0xb56   : > { %3965 = vmatprep.subr.bf16.mxu1 %v3964_v63 }
 0xb59   : > { %3967 = vmatpush3.bf16.msra.mxu1 %v3964_v63 }
 0xc27   : > { %v3726_v38 = vpop.f32.mrb[8].mxu1 }
 0xc28   : > { %v1712_v39 = vadd.f32 %v3726_v38, %v3424_v37  ;;  %v1706_v40 = vpop.f32.mrb[9].mxu1 }
 0xc29   : > { %v1707_v41 = vadd.f32 %v3424_v37, %v1706_v40 }
 0xc2a   : > { %v1716_v43 = vmax.f32 %v1712_v39, 0.0 }
 0xc2b   : > { %v1715_v42 = vmax.f32 %v1707_v41, 0.0 }
 0xc2d   : > { %3743 = vmatprep.mubr.msk.f32.mxu0 %vm1732_vm11, %v1715_v42 }
 0xc2e   : > { %3744 = vmatmul.mubr.msk.f32.vlgmr.msra.gmra.mrb[12].mxu0 %vm1732_vm11, %v1716_v43 }
 0xd01   : > { %v3745_v46 = vpop.f32.mrb[12].mxu0 }
 0xd02   : > { %v1811_v25 = vadd.f32 %v3745_v46, %v3427_v45  ;;  %v1805_v47 = vpop.f32.mrb[13].mxu0 }
 0xd03   : > { %v1806_v48 = vadd.f32 %v3427_v45, %v1805_v47 }
 0xd04   : > { %v1815_v24 = vadd.f32 %v1811_v25, %v1622_v33 }
 0xd05   : > { %v1814_v49 = vadd.f32 %v1806_v48, %v1621_v31 }
 0xd06   : > { %v1821_v50 = vsel %vm1582_vm10, %v1815_v24, 0.0 }
 0xd07   : > { %1822 = vadd.xlane.f32.xlu0 %v1821_v50  ;;  %v1818_v51 = vsel %vm559_vm0, %v1814_v49, 0.0 }
 0xd08   : > { %1819 = vadd.xlane.f32.xlu1 %v1818_v51 }
 0xd94   : > { %v1823_v52 = vpop.xlane.xlu0 %1822 }
 0xd95   : > { %v1825_v14 = vmul.f32 0.03125, %v1823_v52  ;;  %v1820_v15 = vpop.xlane.xlu1 %1819 }
 0xd96   : > { %v1824_v53 = vmul.f32 0.03125, %v1820_v15 }
 0xd97   : > { %v1827_v54 = vsub.f32 %v1815_v24, %v1825_v14 }
 0xd98   : > { %v1826_v55 = vsub.f32 %v1814_v49, %v1824_v53 }
 0xd99   : > { %v1829_v56 = vmul.f32 %v1827_v54, %v1827_v54 }
 0xd9a   : > { %v1828_v57 = vmul.f32 %v1826_v55, %v1826_v55 }
 0xd9b   : > { %v1833_v58 = vsel %vm1582_vm10, %v1829_v56, 0.0 }
 0xd9c   : > { %1834 = vadd.xlane.f32.xlu0 %v1833_v58  ;;  %v1830_v59 = vsel %vm559_vm0, %v1828_v57, 0.0 }
 0xd9d   : > { %1831 = vadd.xlane.f32.xlu1 %v1830_v59 }
 0xe29   : > { %v1835_v0 = vpop.xlane.xlu0 %1834 }
 0xe2a   : > { %v1837_v1 = vmul.f32 0.03125, %v1835_v0  ;;  %v1832_v2 = vpop.xlane.xlu1 %1831 }
 0xe2b   : > { %v1836_v3 = vmul.f32 0.03125, %v1832_v2 }
 0xe2c   : > { %v1839_v4 = vadd.f32 1e-05, %v1837_v1 }
 0xe2d   : > { %v1838_v5 = vadd.f32 1e-05, %v1836_v3 }
 0xe2e   : > { %4230 = vrsqrt.f32 %v1839_v4 }
 0xe2f   : > { %4232 = vrsqrt.f32 %v1838_v5 }
 0xe38   : > { %v4231_v8 = vpop.eup %4230 }
 0xe39   : > { %v4233_v10 = vpop.eup %4232  ;;  %v1843_v11 = vmul.f32 %v4231_v8, %v1827_v54 }
 0xe3a   : > { %v1842_v12 = vmul.f32 %v4233_v10, %v1826_v55 }
 0xe3b   : > { %v1851_v17 = vmul.f32 %v3430_v9, %v1843_v11 }
 0xe3c   : > { %v1850_v18 = vmul.f32 %v3430_v9, %v1842_v12 }
 0xe3d   : > { %v4754_v21 = vadd.f32 %v3431_v16, %v1851_v17 }
 0xe3e   : > { %v4752_v20 = vadd.f32 %v3431_v16, %v1850_v18 }
 0xe40   : > { %3754 = vmatprep.mubr.msk.f32.mxu1 %vm559_vm0, %v4752_v20 }
 0xe41   : > { %3755 = vmatmul.mubr.msk.f32.vlgmr.msra.gmra.mrb[10].mxu1 %vm559_vm0, %v4754_v21 }
 0xf14   : > { %v3756_v22 = vpop.f32.mrb[10].mxu1 }
 0xf15   : > { %v1951_v23 = vadd.f32 %v3756_v22, %v3437_v13  ;;  %v1945_v26 = vpop.f32.mrb[11].mxu1 }
 0xf16   : > { %v1946_v27 = vadd.f32 %v3437_v13, %v1945_v26 }
 0xf17   : > { %v4775_v30 = vmul.f32 0.35355338, %v1951_v23 }
 0xf18   : > { %v4763_v28 = vpack.i.bf16 %v1951_v23, %v1946_v27  ;;  %v4765_v29 = vmul.f32 0.35355338, %v1946_v27 }
 0xf1a   : > { %4160 = vrot.lane.b32.xlu0 %v4763_v28, %s5106_s30  ;;  %4155 = vrot.lane.b32.xlu1 %v4763_v28, %s5107_s18  ;;  %s5116_s30 = smov 8   ;;  %s5117_s18 = smov 40  }
 0xf1b   : > { %3761 = vmatprep.mubr.msk.f32.mxu1 %vm649_vm1, %v4765_v29 }
 0xf1e   : > { %2157 = vrot.lane.b32.xlu1 %v4765_v29, %s5108_s21 }
 0xf22   : > { %2159 = vrot.lane.b32.xlu1 %v4775_v30, %s5108_s21  ;;  %s5118_s21 = smov 16  }
 0xf8c   : > { %v4161_v31 = vpop.permute.xlu0 %4160  ;;  %v4156_v32 = vpop.permute.xlu1 %4155 }
 0xf8d   : > { %v4163_v33 = vunpack.i.h.bf16 %v4161_v31  ;;  %v4162_v34 = vunpack.i.l.bf16 %v4161_v31  ;;  %v4158_v35 = vunpack.i.h.bf16 %v4156_v32  ;;  %v4157_v36 = vunpack.i.l.bf16 %v4156_v32 }
 0xf8f   : > { %v3968_v37 = vpack.c.bf16 %v4158_v35, %v4157_v36  ;;  %v3980_v38 = vpack.c.bf16 %v4163_v33, %v4162_v34 }
 0xf90   : > { %v2158_v39 = vpop.permute.xlu1 %2157 }
 0xf91   : > { %3970 = vmatprep.subr.msk.bf16.mxu1 %vm4539_vm2, %v3968_v37 }
 0xf92   : > { %3973 = vmatpush3.bf16.xpose.msk.msra.mxu1 %vm4539_vm2, %v3968_v37 }
 0xf93   : > { %3982 = vmatprep.subr.msk.bf16.mxu1 %vm4539_vm2, %v3980_v38 }
 0xf94   : > { %v2160_v40 = vpop.permute.xlu1 %2159 }
 0xf99   : > { %3762 = vmatmul.mubr.msk.f32.vlgmr.msra.gmra.mrb[12].mxu1 %vm649_vm1, %v4775_v30 }
 0xf9a   : > { %3985 = vmatpush3.bf16.xpose.msk.msra.mxu1 %vm4539_vm2, %v3980_v38  ;;  %3775 = vmatprep.mubr.msk.f32.mxu1 %vm649_vm1, %v2158_v39 }
 0xfa1   : > { %3776 = vmatmul.mubr.msk.f32.vlgmr.msra.gmra.mrb[14].mxu1 %vm649_vm1, %v2160_v40 }
0x106c   : > { %v3763_v41 = vpop.f32.mrb[12].mxu1 }
0x106d   : > { %v2038_v42 = vpop.f32.mrb[13].mxu1  ;;  %v2050_v43 = vsel %vm739_vm3, %v3763_v41, -inf }
0x106e   : > { %2051 = vmax.xlane.f32.xlu1 %v2050_v43  ;;  %v2047_v45 = vsel %vm735_vm4, %v2038_v42, -inf }
0x106f   : > { %2048 = vmax.xlane.f32.xlu0 %v2047_v45 }
0x1074   : > { %v3777_v46 = vpop.f32.mrb[14].mxu1 }
0x1075   : > { %v2239_v25 = vpop.f32.mrb[15].mxu1  ;;  %v2251_v48 = vsel %vm739_vm3, %v3777_v46, -inf }
0x1076   : > { %v2248_v47 = vsel %vm735_vm4, %v2239_v25, -inf }
0x1077   : > { %2249 = vmax.xlane.f32.xlu0 %v2248_v47 }
0x107b   : > { %2252 = vmax.xlane.f32.xlu0 %v2251_v48 }
0x107f   : > { %4165 = vrot.lane.b32.xlu1 %v4763_v28, %s5109_s22 }
0x10fb   : > { %v2052_v24 = vpop.xlane.xlu1 %2051 }
0x10fc   : > { %v2054_v49 = vsub.f32 %v3763_v41, %v2052_v24  ;;  %v2049_v50 = vpop.xlane.xlu0 %2048 }
0x10fd   : > { %v2053_v51 = vsub.f32 %v2038_v42, %v2049_v50 }
0x10fe   : > { %v2057_v52 = vmul.f32 1.442695, %v2054_v49 }
0x10ff   : > { %v2055_v14 = vmul.f32 1.442695, %v2053_v51  ;;  %v4166_v15 = vpop.permute.xlu1 %4165 }
0x1100   : > { %4234 = vpow2.f32 %v2057_v52  ;;  %v4168_v53 = vunpack.i.h.bf16 %v4166_v15  ;;  %v4167_v54 = vunpack.i.l.bf16 %v4166_v15 }
0x1101   : > { %4236 = vpow2.f32 %v2055_v14 }
0x1102   : > { %v3974_v55 = vpack.c.bf16 %v4168_v53, %v4167_v54 }
0x1104   : > { %3976 = vmatprep.subr.msk.bf16.mxu0 %vm4561_vm7, %v3974_v55  ;;  %v2250_v56 = vpop.xlane.xlu0 %2249 }
0x1105   : > { %3979 = vmatpush3.bf16.msk.msra.mxu0 %vm4561_vm7, %v3974_v55  ;;  %v2254_v0 = vsub.f32 %v2239_v25, %v2250_v56 }
0x1107   : > { %v2256_v1 = vmul.f32 1.442695, %v2254_v0 }
0x1108   : > { %v2253_v57 = vpop.xlane.xlu0 %2252 }
0x1109   : > { %v2255_v58 = vsub.f32 %v3777_v46, %v2253_v57 }
0x110a   : > { %v4235_v59 = vpop.eup %4234 }
0x110b   : > { %v4237_v60 = vpop.eup %4236  ;;  %v2258_v7 = vmul.f32 1.442695, %v2255_v58  ;;  %v2062_v6 = vsel %vm739_vm3, %v4235_v59, 0.0 }
0x110c   : > { %2063 = vadd.xlane.f32.xlu0 %v2062_v6  ;;  %v2059_v61 = vsel %vm735_vm4, %v4237_v60, 0.0 }
0x110d   : > { %4238 = vpow2.f32 %v2258_v7  ;;  %2060 = vadd.xlane.f32.xlu1 %v2059_v61 }
0x110e   : > { %4240 = vpow2.f32 %v2256_v1 }
0x1117   : > { %v4239_v62 = vpop.eup %4238 }
0x1118   : > { %v2263_v63 = vsel %vm739_vm3, %v4239_v62, 0.0  ;;  %v4241_v2 = vpop.eup %4240 }
0x1119   : > { %2264 = vadd.xlane.f32.xlu0 %v2263_v63  ;;  %v2260_v3 = vsel %vm735_vm4, %v4241_v2, 0.0 }
0x111e   : > { %4175 = vrot.lane.b32.xlu1 %v4763_v28, %s5110_s19  ;;  %s539_s19 = sand.u32 1, %s4326_s25  }
0x111f   : > { %s3315_s22 = scalar_lea.sflag [#allocation3], %s539_s19 }
0x112f   : > { %4170 = vrot.lane.b32.xlu0 %v4763_v28, %s5111_s20 }
0x1133   : > { %2360 = vrot.lane.b32.xlu0 %v4775_v30, %s5112_s29 }
0x1142   : > { %2261 = vadd.xlane.f32.xlu1 %v2260_v3 }
0x1153   : > { %2358 = vrot.lane.b32.xlu1 %v4765_v29, %s5112_s29 }
0x1199   : > { %v2064_v4 = vpop.xlane.xlu0 %2063 }
0x119a   : > { %4242 = vrcp.f32 %v2064_v4  ;;  %v2061_v5 = vpop.xlane.xlu1 %2060 }
0x119b   : > { %4244 = vrcp.f32 %v2061_v5 }
0x119e   : > { %v4176_v16 = vpop.permute.xlu1 %4175 }
0x119f   : > { %v4178_v18 = vunpack.i.h.bf16 %v4176_v16  ;;  %v4177_v13 = vunpack.i.l.bf16 %v4176_v16 }
0x11a1   : > { %v3992_v27 = vpack.c.bf16 %v4178_v18, %v4177_v13 }
0x11a4   : > { %v4243_v8 = vpop.eup %4242 }
0x11a5   : > { %v4245_v9 = vpop.eup %4244  ;;  %v2068_v12 = vmul.f32 %v4243_v8, %v4235_v59 }
0x11a6   : > { %v2265_v10 = vpop.xlane.xlu0 %2264  ;;  %v2067_v11 = vmul.f32 %v4245_v9, %v4237_v60 }
0x11a7   : > { %4246 = vrcp.f32 %v2265_v10 }
0x11a8   : > { %3768 = vmatprep.mubr.msk.f32.mxu0 %vm735_vm4, %v2067_v11 }
0x11a9   : > { %3769 = vmatmul.mubr.msk.f32.vlgmr.msra.gmra.mrb[14].mxu0 %vm735_vm4, %v2068_v12 }
0x11aa   : > { %v4171_v17 = vpop.permute.xlu0 %4170 }
0x11ab   : > { %v4173_v22 = vunpack.i.h.bf16 %v4171_v17  ;;  %v4172_v23 = vunpack.i.l.bf16 %v4171_v17 }
0x11ad   : > { %v3986_v26 = vpack.c.bf16 %v4173_v22, %v4172_v23 }
0x11ae   : > { %v2361_v37 = vpop.permute.xlu0 %2360 }
0x11af   : > { %3988 = vmatprep.subr.msk.bf16.mxu0 %vm4561_vm7, %v3986_v26 }
0x11b0   : > { %3991 = vmatpush3.bf16.msk.msra.mxu0 %vm4561_vm7, %v3986_v26 }
0x11b1   : > { %3994 = vmatprep.subr.msk.bf16.mxu0 %vm4539_vm2, %v3992_v27  ;;  %v4247_v32 = vpop.eup %4246 }
0x11b2   : > { %v2269_v35 = vmul.f32 %v4247_v32, %v4239_v62 }
0x11cf   : > { %v2262_v31 = vpop.xlane.xlu1 %2261 }
0x11d0   : > { %4248 = vrcp.f32 %v2262_v31 }
0x11d3   : > { %v2359_v36 = vpop.permute.xlu1 %2358 }
0x11da   : > { %v4249_v33 = vpop.eup %4248 }
0x11db   : > { %v2268_v34 = vmul.f32 %v4249_v33, %v4241_v2 }
0x11dd   : > { %3782 = vmatprep.mubr.msk.f32.mxu0 %vm735_vm4, %v2268_v34 }
0x11de   : > { %3783 = vmatmul.mubr.msk.f32.vlgmr.msra.gmra.mrb[16].mxu0 %vm735_vm4, %v2269_v35 }
0x11df   : > { %3997 = vmatpush3.bf16.xpose.msk.msra.mxu0 %vm4539_vm2, %v3992_v27  ;;  %3789 = vmatprep.mubr.msk.f32.mxu0 %vm649_vm1, %v2359_v36 }
0x11e6   : > { %3790 = vmatmul.mubr.msk.f32.vlgmr.msra.gmra.mrb[18].mxu0 %vm649_vm1, %v2361_v37  ;;  %v3468_v37 = vld [vmem:[%s5048_s3 + $0x20] sm:$0xff] }
0x127c   : > { %v4827_v38 = vpop.f32.mrb[14].mxu0 }
0x127d   : > { %v4829_v39 = vpop.f32.mrb[15].mxu0 }
0x12b1   : > { %v4831_v40 = vpop.f32.mrb[16].mxu0 }
0x12b2   : > { %v4833_v41 = vpop.f32.mrb[17].mxu0 }
0x12b9   : > { %v3791_v42 = vpop.f32.mrb[18].mxu0 }
0x12ba   : > { %v2440_v43 = vpop.f32.mrb[19].mxu0  ;;  %v2452_v45 = vsel %vm739_vm3, %v3791_v42, -inf }
0x12bb   : > { %2453 = vmax.xlane.f32.xlu0 %v2452_v45  ;;  %v2449_v46 = vsel %vm735_vm4, %v2440_v43, -inf }
0x12bc   : > { %2450 = vmax.xlane.f32.xlu1 %v2449_v46 }
0x1348   : > { %v2454_v25 = vpop.xlane.xlu0 %2453 }
0x1349   : > { %v2456_v47 = vsub.f32 %v3791_v42, %v2454_v25  ;;  %v2451_v48 = vpop.xlane.xlu1 %2450  ;;  %v3471_v42 = vld [vmem:[%s5048_s3 + $0x38] sm:$0xff] }
0x134a   : > { %v2455_v24 = vsub.f32 %v2440_v43, %v2451_v48  ;;  %v4020_v43 = vpack.c.bf16 %v3471_v42, %v3470_v44 }
0x134b   : > { %v2459_v49 = vmul.f32 1.442695, %v2456_v47 }
0x134c   : > { %v2457_v50 = vmul.f32 1.442695, %v2455_v24 }
0x134d   : > { %4250 = vpow2.f32 %v2459_v49 }
0x134e   : > { %4252 = vpow2.f32 %v2457_v50 }
0x1357   : > { %v4251_v51 = vpop.eup %4250 }
0x1358   : > { %v4253_v52 = vpop.eup %4252  ;;  %v2464_v14 = vsel %vm739_vm3, %v4251_v51, 0.0 }
0x1359   : > { %2465 = vadd.xlane.f32.xlu1 %v2464_v14  ;;  %v2461_v15 = vsel %vm735_vm4, %v4253_v52, 0.0 }
0x135a   : > { %2462 = vadd.xlane.f32.xlu0 %v2461_v15 }
0x136a   : > { %4185 = vrot.lane.b32.xlu1 %v4763_v28, %s5113_s26  ;;  %s3506_s26 = sshll.u32 %s4466_s28, 4  ;;  %s4354_s28 = smov [#allocation2]  }
0x136b   : > { %s4276_s29 = sshll.u32 %s4354_s28, 4  ;;  %s4277_s29 = int_to_ptr.vmem [resolvable:$false] %s4276_s29 }
0x136c   : > { %s4278_s2 = scalar_lea.vmem %s4277_s29, 32 }
0x136e   : > { %2559 = vrot.lane.b32.xlu1 %v4765_v29, %s5114_s0 }
0x1370   : > { %4180 = vrot.lane.b32.xlu0 %v4763_v28, %s5115_s24 }
0x1374   : > { %2561 = vrot.lane.b32.xlu0 %v4775_v30, %s5114_s0  ;;  %s540_s0 = scalar_lea.vmem [#allocation2], %s539_s19 }
0x1375   : > { %s3327_s24 = sshll.u32 %s540_s0, 4  ;;  %s5005_s24 = int_to_ptr.vmem [resolvable:$true] %s3327_s24 }
0x1376   : > { %s4272_s20 = scalar_lea.vmem %s5005_s24, 16  ;;  %p4279_p0 = scmp.lt.s32.totalorder %s5005_s24, %s4277_s29 }
0x1377   : > { %p4273_p11 = scmp.ne.s32.totalorder %s5005_s24, %s4272_s20  ;;  %p4280_p1 = scmp.lt.s32.totalorder %s4278_s2, %s4272_s20 }
0x1379   : > { %p4274_p12 = pnand %p4273_p11, %p4483_p5  ;;  %p4281_p2 = por %p4280_p1, %p4279_p0 }
0x137b   : > { %p4275_p13 = pneg %p4274_p12 }
0x137d   : > { %p4282_p3 = pnand %p4281_p2, %p4275_p13 }
0x13e6   : > { %v2466_v53 = vpop.xlane.xlu1 %2465 }
0x13e7   : > { %4254 = vrcp.f32 %v2466_v53  ;;  %v2463_v54 = vpop.xlane.xlu0 %2462 }
0x13e8   : > { %4256 = vrcp.f32 %v2463_v54 }
0x13ea   : > { %v4186_v55 = vpop.permute.xlu1 %4185 }
0x13eb   : > { %v4181_v56 = vpop.permute.xlu0 %4180  ;;  %v4188_v57 = vunpack.i.h.bf16 %v4186_v55  ;;  %v4187_v58 = vunpack.i.l.bf16 %v4186_v55 }
0x13ec   : > { %v4183_v59 = vunpack.i.h.bf16 %v4181_v56  ;;  %v4182_v60 = vunpack.i.l.bf16 %v4181_v56 }
0x13ed   : > { %v4004_v6 = vpack.c.bf16 %v4188_v57, %v4187_v58 }
0x13ee   : > { %v3998_v7 = vpack.c.bf16 %v4183_v59, %v4182_v60  ;;  %v2560_v63 = vpop.permute.xlu1 %2559 }
0x13ef   : > { %v2562_v0 = vpop.permute.xlu0 %2561 }
0x13f0   : > { %4000 = vmatprep.subr.msk.bf16.mxu1 %vm4561_vm7, %v3998_v7 }
0x13f1   : > { %v4255_v29 = vpop.eup %4254  ;;  %4003 = vmatpush3.bf16.msk.msra.mxu1 %vm4561_vm7, %v3998_v7 }
0x13f2   : > { %v4257_v30 = vpop.eup %4256  ;;  %4006 = vmatprep.subr.msk.bf16.mxu1 %vm4539_vm2, %v4004_v6  ;;  %v2470_v62 = vmul.f32 %v4255_v29, %v4251_v51 }
0x13f3   : > { %v2469_v61 = vmul.f32 %v4257_v30, %v4253_v52 }
0x13f5   : > { %3796 = vmatprep.mubr.msk.f32.mxu1 %vm735_vm4, %v2469_v61 }
0x13f6   : > { %3797 = vmatmul.mubr.msk.f32.vlgmr.msra.gmra.mrb[16].mxu1 %vm735_vm4, %v2470_v62 }
0x13f7   : > { %3803 = vmatprep.mubr.msk.f32.mxu1 %vm649_vm1, %v2560_v63 }
0x13fa   : > { %4009 = vmatpush3.bf16.xpose.msk.msra.mxu1 %vm4539_vm2, %v4004_v6 }
0x1401   : > { %3804 = vmatmul.mubr.msk.f32.vlgmr.msra.gmra.mrb[18].mxu1 %vm649_vm1, %v2562_v0 }
0x14c9   : > { %v3798_v1 = vpop.f32.mrb[16].mxu1 }
0x14ca   : > { %v2550_v2 = vpop.f32.mrb[17].mxu1 }
0x14d4   : > { %v3805_v3 = vpop.f32.mrb[18].mxu1 }
0x14d5   : > { %v2641_v4 = vpop.f32.mrb[19].mxu1  ;;  %v2653_v5 = vsel %vm739_vm3, %v3805_v3, -inf }
0x14d6   : > { %2654 = vmax.xlane.f32.xlu0 %v2653_v5  ;;  %v2650_v8 = vsel %vm735_vm4, %v2641_v4, -inf  ;;  %v3482_v5 = vld [vmem:[%s5052_s7 + $0x30] sm:$0xff] }
0x14d7   : > { %2651 = vmax.xlane.f32.xlu1 %v2650_v8  ;;  %v3483_v8 = vld [vmem:[%s5052_s7 + $0x38] sm:$0xff] }
0x1563   : > { %v2655_v9 = vpop.xlane.xlu0 %2654 }
0x1564   : > { %v2657_v10 = vsub.f32 %v3805_v3, %v2655_v9  ;;  %v2652_v11 = vpop.xlane.xlu1 %2651  ;;  %v3481_v3 = vld [vmem:[%s5052_s7 + $0x28] sm:$0xff]  ;;  %v4028_v9 = vpack.c.bf16 %v3483_v8, %v3482_v5 }
0x1565   : > { %v2656_v12 = vsub.f32 %v2641_v4, %v2652_v11  ;;  %v3489_v11 = vld [vmem:[%s5054_s9 + $0x48] sm:$0xff] }
0x1566   : > { %v2660_v16 = vmul.f32 1.442695, %v2657_v10  ;;  %v3488_v10 = vld [vmem:[%s5054_s9 + $0x40] sm:$0xff] }
0x1567   : > { %v2658_v19 = vmul.f32 1.442695, %v2656_v12  ;;  %v3490_v12 = vld [vmem:[%s5054_s9 + $0x50] sm:$0xff] }
0x1568   : > { %4258 = vpow2.f32 %v2660_v16  ;;  %v4032_v16 = vpack.c.bf16 %v3489_v11, %v3488_v10  ;;  %v3237_v10 = vld [vmem:[%s5060_s15 + $0x8] sm:$0xff] }
0x1569   : > { %4260 = vpow2.f32 %v2658_v19  ;;  %v3491_v19 = vld [vmem:[%s5054_s9 + $0x58] sm:$0xff] }
0x1572   : > { %v4259_v17 = vpop.eup %4258 }
0x1573   : > { %v4261_v18 = vpop.eup %4260  ;;  %v2665_v13 = vsel %vm739_vm3, %v4259_v17, 0.0 }
0x1574   : > { %2666 = vadd.xlane.f32.xlu1 %v2665_v13  ;;  %v2662_v22 = vsel %vm735_vm4, %v4261_v18, 0.0  ;;  %v3493_v13 = vld [vmem:[%s5054_s9 + $0x68] sm:$0xff] }
0x1575   : > { %2663 = vadd.xlane.f32.xlu0 %v2662_v22 }
0x1585   : > { %2762 = vrot.lane.b32.xlu1 %v4833_v41, %s5116_s30 }
0x1589   : > { %2764 = vrot.lane.b32.xlu1 %v4831_v40, %s5116_s30  ;;  %v3469_v40 = vld [vmem:[%s5048_s3 + $0x28] sm:$0xff] }
0x158a   : > { %v4016_v41 = vpack.c.bf16 %v3469_v40, %v3468_v37 }
0x158b   : > { %4190 = vrot.lane.b32.xlu0 %v4763_v28, %s5117_s18  ;;  %s5119_s18 = smov 24  }
0x158d   : > { %2772 = vrot.lane.b32.xlu1 %v3798_v1, %s5118_s21 }
0x158f   : > { %2770 = vrot.lane.b32.xlu0 %v2550_v2, %s5118_s21  ;;  %s5003_s21 = scalar_lea.hbm %s5062_s17, %s3506_s26 }
0x1601   : > { %v2667_v23 = vpop.xlane.xlu1 %2666 }
0x1602   : > { %4262 = vrcp.f32 %v2667_v23  ;;  %v2664_v26 = vpop.xlane.xlu0 %2663 }
0x1603   : > { %4264 = vrcp.f32 %v2664_v26 }
0x1605   : > { %v2763_v25 = vpop.permute.xlu1 %2762 }
0x1606   : > { %v4191_v27 = vpop.permute.xlu0 %4190  ;;  %v2784_v49 = vsel %vm649_vm1, %v4829_v39, %v2763_v25  ;;  %v3473_v39 = vld [vmem:[%s5049_s4 + $0x1] ss:$0 sm:$0xff] }
0x1607   : > { %v4193_v31 = vunpack.i.h.bf16 %v4191_v27  ;;  %v4192_v32 = vunpack.i.l.bf16 %v4191_v27 }
0x1609   : > { %v4010_v33 = vpack.c.bf16 %v4193_v31, %v4192_v32  ;;  %v2765_v47 = vpop.permute.xlu1 %2764 }
0x160a   : > { %v2771_v24 = vpop.permute.xlu0 %2770  ;;  %v2785_v51 = vsel %vm649_vm1, %v4827_v38, %v2765_v47  ;;  %v3485_v47 = vld [vmem:[%s5053_s8 + $0x1] ss:$0 sm:$0xff] }
0x160b   : > { %4012 = vmatprep.subr.msk.bf16.mxu0 %vm4561_vm7, %v4010_v33  ;;  %v2786_v52 = vsel %vm1477_vm8, %v2784_v49, %v2771_v24 }
0x160c   : > { %v4263_v34 = vpop.eup %4262  ;;  %4015 = vmatpush3.bf16.msk.msra.mxu0 %vm4561_vm7, %v4010_v33 }
0x160d   : > { %v4265_v28 = vpop.eup %4264  ;;  %v2671_v36 = vmul.f32 %v4263_v34, %v4259_v17  ;;  %4017 = vmatprep.subr.bf16.mxu0 %v4016_v41  ;;  %v2773_v48 = vpop.permute.xlu1 %2772  ;;  %v4036_v17 = vpack.c.bf16 %v3491_v19, %v3490_v12  ;;  %v3161_v12 = vld [vmem:[%s5059_s14] sm:$0x1] }
0x160e   : > { %v2670_v35 = vmul.f32 %v4265_v28, %v4261_v18  ;;  %v2787_v15 = vsel %vm1477_vm8, %v2785_v51, %v2773_v48  ;;  %v3492_v18 = vld [vmem:[%s5054_s9 + $0x60] sm:$0xff] }
0x160f   : > { %v4040_v22 = vpack.c.bf16 %v3493_v13, %v3492_v18  ;;  %v3478_v28 = vld [vmem:[%s5050_s5 + $0x1] ss:$0 sm:$0xff]  ;;  %v3238_v13 = vld [vmem:[%s5061_s16] sm:$0x1] }
0x1610   : > { %3810 = vmatprep.mubr.msk.f32.mxu0 %vm735_vm4, %v2670_v35 }
0x1611   : > { %3811 = vmatmul.mubr.msk.f32.vlgmr.msra.gmra.mrb[20].mxu0 %vm735_vm4, %v2671_v36  ;;  %v3479_v36 = vld [vmem:[%s5051_s6 + $0x1] ss:$0 sm:$0xff] }
0x1612   : > { %4019 = vmatpush3.bf16.msra.mxu0 %v4016_v41 }
0x1613   : > { %4021 = vmatprep.subr.bf16.mxu0 %v4020_v43 }
0x1616   : > { %4023 = vmatpush3.bf16.msra.mxu0 %v4020_v43 }
0x1617   : > { %4033 = vmatprep.subr.bf16.mxu0 %v4032_v16 }
0x16e4   : > { %v3812_v45 = vpop.f32.mrb[20].mxu0 }
0x16e5   : > { %2780 = vrot.lane.b32.xlu1 %v3812_v45, %s5119_s18  ;;  %v2751_v46 = vpop.f32.mrb[21].mxu0  ;;  %v3494_v45 = vld [vmem:[%s5054_s9 + $0x70] sm:$0xff] }
0x16e6   : > { %2778 = vrot.lane.b32.xlu0 %v2751_v46, %s5119_s18  ;;  %v3495_v46 = vld [vmem:[%s5054_s9 + $0x78] sm:$0xff] }
0x16e7   : > { %v4044_v25 = vpack.c.bf16 %v3495_v46, %v3494_v45 }
0x1757   : > { %v2781_v50 = vpop.permute.xlu1 %2780 }
0x1758   : > { %v2779_v14 = vpop.permute.xlu0 %2778  ;;  %v2789_v54 = vsel %vm1480_vm9, %v2787_v15, %v2781_v50 }
0x1759   : > { %v2788_v53 = vsel %vm1480_vm9, %v2786_v52, %v2779_v14  ;;  %v3497_v14 = vld [vmem:[%s5055_s10 + $0x1] ss:$0 sm:$0xff] }
0x175a   : > { %3821 = vmatprep.mubr.msk.f32.mxu0 %vm559_vm0, %v2788_v53 }
0x175b   : > { %3822 = vmatmul.mubr.msk.f32.vlgmr.msra.gmra.mrb[22].mxu0 %vm559_vm0, %v2789_v54 }
0x175c   : > { %4035 = vmatpush3.bf16.msra.mxu0 %v4032_v16 }
0x175d   : > { %4037 = vmatprep.subr.bf16.mxu0 %v4036_v17 }
0x1760   : > { %4039 = vmatpush3.bf16.msra.mxu0 %v4036_v17 }
0x1761   : > { %4041 = vmatprep.subr.bf16.mxu0 %v4040_v22 }
0x1764   : > { %4043 = vmatpush3.bf16.msra.mxu0 %v4040_v22 }
0x1765   : > { %4045 = vmatprep.subr.bf16.mxu0 %v4044_v25 }
0x1768   : > { %4047 = vmatpush3.bf16.msra.mxu0 %v4044_v25 }
0x182e   : > { %v3823_v55 = vpop.f32.mrb[22].mxu0 }
0x182f   : > { %v2881_v56 = vadd.f32 %v3823_v55, %v3473_v39  ;;  %v2875_v38 = vpop.f32.mrb[23].mxu0 }
0x1830   : > { %v2876_v57 = vadd.f32 %v3473_v39, %v2875_v38 }
0x1831   : > { %v2885_v58 = vadd.f32 %v2881_v56, %v4754_v21 }
0x1832   : > { %v2884_v59 = vadd.f32 %v2876_v57, %v4752_v20  ;;  %v3480_v20 = vld [vmem:[%s5052_s7 + $0x20] sm:$0xff] }
0x1833   : > { %v2893_v60 = vsel %vm1582_vm10, %v2885_v58, 0.0  ;;  %v4024_v4 = vpack.c.bf16 %v3481_v3, %v3480_v20  ;;  %v3502_v20 = vld [vmem:[%s5056_s11 + $0x1] ss:$0 sm:$0xff] }
0x1834   : > { %2894 = vadd.xlane.f32.xlu1 %v2893_v60  ;;  %v2890_v7 = vsel %vm559_vm0, %v2884_v59, 0.0  ;;  %v3157_v60 = vld [vmem:[%s5058_s13] sm:$0xff] }
0x1835   : > { %2891 = vadd.xlane.f32.xlu0 %v2890_v7  ;;  %4025 = vmatprep.subr.bf16.mxu1 %v4024_v4  ;;  %v3158_v7 = vld [vmem:[%s5058_s13 + $0x8] sm:$0xff] }
0x1836   : > { %4027 = vmatpush3.bf16.msra.mxu1 %v4024_v4  ;;  %v3503_v4 = vld [vmem:[%s5057_s12 + $0x1] ss:$0 sm:$0xff] }
0x1837   : > { %4029 = vmatprep.subr.bf16.mxu1 %v4028_v9 }
0x183a   : > { %4031 = vmatpush3.bf16.msra.mxu1 %v4028_v9  ;;  %v3236_v9 = vld [vmem:[%s5060_s15] sm:$0xff] }
0x183b   : > { %v4055_v11 = vpack.c.bf16 %v3237_v10, %v3236_v9 }
0x18c1   : > { %v2895_v6 = vpop.xlane.xlu1 %2894 }
0x18c2   : > { %v2897_v29 = vmul.f32 0.03125, %v2895_v6  ;;  %v2892_v30 = vpop.xlane.xlu0 %2891  ;;  %v4049_v6 = vpack.c.bf16 %v3158_v7, %v3157_v60 }
0x18c3   : > { %v2896_v61 = vmul.f32 0.03125, %v2892_v30  ;;  %v3159_v30 = vld [vmem:[%s5058_s13 + $0x10] sm:$0xff] }
0x18c4   : > { %v2899_v62 = vsub.f32 %v2885_v58, %v2897_v29  ;;  %v4351_v29 = vmov 0.0|0.0  }
0x18c5   : > { %v2898_v63 = vsub.f32 %v2884_v59, %v2896_v61  ;;  %4048 = vmatprep.subr.bf16.mxu1 %v4351_v29  ;;  %v3160_v61 = vld [vmem:[%s5058_s13 + $0x18] sm:$0xff] }
0x18c6   : > { %v2901_v2 = vmul.f32 %v2899_v62, %v2899_v62 }
0x18c7   : > { %v2900_v0 = vmul.f32 %v2898_v63, %v2898_v63 }
0x18c8   : > { %v2905_v21 = vsel %vm1582_vm10, %v2901_v2, 0.0 }
0x18c9   : > { %v2902_v1 = vsel %vm559_vm0, %v2900_v0, 0.0 }
0x18ca   : > { %2903 = vadd.xlane.f32.xlu0 %v2902_v1 }
0x18ce   : > { %2906 = vadd.xlane.f32.xlu0 %v2905_v21 }
0x1957   : > { %v2904_v23 = vpop.xlane.xlu0 %2903 }
0x1958   : > { %v2908_v26 = vmul.f32 0.03125, %v2904_v23 }
0x195a   : > { %v2910_v27 = vadd.f32 1e-05, %v2908_v26 }
0x195b   : > { %v2907_v31 = vpop.xlane.xlu0 %2906 }
0x195c   : > { %4266 = vrsqrt.f32 %v2910_v27  ;;  %v2909_v32 = vmul.f32 0.03125, %v2907_v31 }
0x195e   : > { %v2911_v33 = vadd.f32 1e-05, %v2909_v32 }
0x1960   : > { %4268 = vrsqrt.f32 %v2911_v33 }
0x1966   : > { %v4267_v34 = vpop.eup %4266 }
0x1967   : > { %v2914_v35 = vmul.f32 %v4267_v34, %v2898_v63  ;;  %v4353_v63 = vmov 0.0  }
0x1969   : > { %v2922_v37 = vmul.f32 %v3478_v28, %v2914_v35 }
0x196a   : > { %v4269_v40 = vpop.eup %4268 }
0x196b   : > { %v2915_v44 = vmul.f32 %v4269_v40, %v2899_v62  ;;  %v2930_v41 = vadd.f32 %v3479_v36, %v2922_v37  ;;  %v4052_v62 = vpack.c.bf16 %v3160_v61, %v3159_v30 }
0x196d   : > { %v2923_v42 = vmul.f32 %v3478_v28, %v2915_v44  ;;  %3832 = vmatprep.mubr.msk.f32.mxu1 %vm559_vm0, %v2930_v41 }
0x196f   : > { %v2931_v43 = vadd.f32 %v3479_v36, %v2923_v42 }
0x1971   : > { %3833 = vmatmul.mubr.msk.f32.vlgmr.msra.gmra.mrb[20].mxu1 %vm559_vm0, %v2931_v43 }
0x1972   : > { %4050 = vmatpush3.bf16.msra.mxu1 %v4049_v6  ;;  %3862 = vmatprep.mubr.msk.f32.mxu1 %vm4352_vm12, %v4353_v63 }
0x1973   : > { %4051 = vmatprep.subr.bf16.mxu1 %v4351_v29 }
0x1976   : > { %4053 = vmatpush3.bf16.msra.mxu1 %v4052_v62 }
0x1977   : > { %4054 = vmatprep.subr.bf16.mxu1 %v4351_v29 }
0x1a44   : > { %v3834_v48 = vpop.f32.mrb[20].mxu1 }
0x1a45   : > { %v3023_v24 = vadd.f32 %v3834_v48, %v3485_v47  ;;  %v3017_v49 = vpop.f32.mrb[21].mxu1 }
0x1a46   : > { %v3018_v50 = vadd.f32 %v3485_v47, %v3017_v49 }
0x1a47   : > { %v3027_v52 = vmax.f32 %v3023_v24, 0.0 }
0x1a48   : > { %v3026_v51 = vmax.f32 %v3018_v50, 0.0 }
0x1a4a   : > { %3851 = vmatprep.mubr.msk.f32.mxu0 %vm1732_vm11, %v3026_v51 }
0x1a4b   : > { %3852 = vmatmul.mubr.msk.f32.vlgmr.msra.gmra.mrb[24].mxu0 %vm1732_vm11, %v3027_v52 }
0x1b1e   : > { %v3853_v15 = vpop.f32.mrb[24].mxu0 }
0x1b1f   : > { %v3117_v53 = vpop.f32.mrb[25].mxu0 }
0x1b20   : > { %v3118_v54 = vadd.f32 %v3497_v14, %v3117_v53 }
0x1b22   : > { %v3125_v39 = vadd.f32 %v3118_v54, %v2930_v41 }
0x1b24   : > { %v3130_v55 = vsel %vm559_vm0, %v3125_v39, 0.0 }
0x1b25   : > { %3131 = vadd.xlane.f32.xlu1 %v3130_v55 }
0x1bb2   : > { %v3132_v56 = vpop.xlane.xlu1 %3131 }
0x1bb3   : > { %v3133_v38 = vmul.f32 0.03125, %v3132_v56 }
0x1bb5   : > { %v3134_v57 = vsub.f32 %v3125_v39, %v3133_v38 }
0x1bb7   : > { %v3135_v58 = vmul.f32 %v3134_v57, %v3134_v57 }
0x1bb9   : > { %v3136_v59 = vsel %vm559_vm0, %v3135_v58, 0.0 }
0x1bba   : > { %3137 = vadd.xlane.f32.xlu0 %v3136_v59 }
0x1c47   : > { %v3138_v0 = vpop.xlane.xlu0 %3137 }
0x1c48   : > { %v3139_v1 = vmul.f32 0.03125, %v3138_v0 }
0x1c4a   : > { %v3140_v2 = vadd.f32 1e-05, %v3139_v1 }
0x1c4c   : > { %4270 = vrsqrt.f32 %v3140_v2 }
0x1c56   : > { %v4271_v21 = vpop.eup %4270 }
0x1c57   : > { %v3142_v3 = vmul.f32 %v4271_v21, %v3134_v57 }
0x1c59   : > { %v3149_v5 = vmul.f32 %v3502_v20, %v3142_v3 }
0x1c5b   : > { %v3156_v8 = vadd.f32 %v3503_v4, %v3149_v5 }
0x1c5d   : > { %3863 = vmatmul.mubr.msk.f32.vlgmr.msra.gmra.mrb[22].mxu1 %vm559_vm0, %v3156_v8 }
0x1c5e   : > { %3869 = vmatprep.mubr.msk.f32.mxu1 %vm4352_vm12, %v4353_v63  ;;  %4056 = vmatpush3.bf16.msra.mxu1 %v4055_v11 }
0x1d30   : > { %v3231_v16 = vpop.f32.mrb[22].mxu1 }
0x1d31   : > { %v3232_v19 = vadd.f32 %v3231_v16, %v3161_v12  ;;  %v3864_v17 = vpop.f32.mrb[23].mxu1 }
0x1d33   : > { %v3235_v18 = vmax.f32 %v3232_v19, 0.0 }
0x1d35   : > { %3870 = vmatmul.mubr.msk.f32.vlgmr.msra.gmra.mrb[24].mxu1 %vm1477_vm8, %v3235_v18 }
0x1e08   : > { %v3308_v22 = vpop.f32.mrb[24].mxu1 }
0x1e09   : > { %v3309_v23 = vadd.f32 %v3308_v22, %v3238_v13  ;;  %v3871_v26 = vpop.f32.mrb[25].mxu1 }
0x1e0b   : > { %3313 = vst.msk [vmem:[%s540_s0] sm:$0x1] %vm3312_vm13, %v3309_v23 }
0x1e0c   : > { %4285 = shalt.err (!%p4282_p3)
}
0x1e0d   : > { %s4286_s19 = scalar_lea.hbm %s5003_s21, 16  ;;  %s4290_s30 = scalar_lea.hbm %s5062_s17, 32 }
0x1e0e   : > { %p4287_p4 = scmp.ne.s32.totalorder %s5003_s21, %s4286_s19  ;;  %p4291_p9 = scmp.lt.u32.totalorder %s5003_s21, %s5062_s17 }
0x1e0f   : > { %p4292_p10 = scmp.lt.u32.totalorder %s4290_s30, %s4286_s19  ;;  %p4294_p12 = scmp.lt.u32.totalorder %s4286_s19, %s5003_s21 }
0x1e10   : > { %p4288_p7 = pnand %p4287_p4, %p4483_p5 }
0x1e11   : > { %p4293_p11 = por %p4292_p10, %p4291_p9 }
0x1e12   : > { %p4289_p8 = pneg %p4288_p7 }
0x1e13   : > { %p4295_p13 = por %p4294_p12, %p4293_p11 }
0x1e15   : > { %p4296_p0 = pnand %p4295_p13, %p4289_p8 }
0x1e17   : > { %4299 = shalt.err (!%p4296_p0)
}
0x1e18   : > { %4057 = dma.vmem_to_hbm [thread:$0]  (%p4483_p5), %s5005_s24, 16, %s5003_s21, %s3315_s22  }
0x1e19 PF: > { %s5120_s2 = sld [smem:[#allocation5_spill]]  ;;  %p4063_p1 = scmp.ge.s32.totalorder %s4334_s27, 2 }
0x1e1b   : > { %p4060_p2 = pnand %p4063_p1, %p4487_p6 }
0x1e1f   : > { %s3339_s29 = sand.u32 1, %s5120_s2  }
0x1e20   : > { %s3340_s26 = scalar_lea.sflag [#allocation3], %s3339_s29 }
0x1e21   : > { %4317 = dma.done.wait (!%p4060_p2), %s3340_s26, 16  }
0x1e22   : > { %4319 = vsyncadd (!%p4060_p2), %s3340_s26, 4294967280  ;;  %s5122_s27 = sld [smem:[#allocation7_spill]]  ;;  %s5123_s19 = sld [smem:[#allocation6_spill]] }
0x1e23   : > { %s5124_s26 = sld [smem:[#allocation8_spill]]  ;;  %s5125_s24 = smov %s4326_s25 }
0x1e28   : > { %p27_p3 = scmp.ge.s32.totalorder %s5122_s27, 4   ;;  %s5126_s25 = smov %s5123_s19 }
0x1e2a   :  { %29 = sbr.rel (!%p27_p3) target bundleno = 7 (0x7), region = 135 }
0x1e31   :  { %3344 = vsyncpa [#allocation3], 1 }
0x1e32   :  { %3346 = vsyncpa [#allocation3 + $0x1], 1 }

</bundles_post_ra>
